<compile_context>
chip_gen: v7x
topology: tpu7x:2x2x1
jax: 0.10.0
libtpu: 0.0.40
codegen_flags: <defaults>
</compile_context>

<pallas_src>
import functools

import jax
import jax.numpy as jnp
from jax.experimental import pallas as pl
from jax.experimental.pallas import tpu as pltpu

SIGMA_DATA = 0.5   # sigma_data default of EDMPrecondSuperResolution


# ----------------------------------------------------------------------------
# Fused Pallas kernel: precond-in + conv3x3 + FiLM/SiLU + conv1x1 + precond-out
# ----------------------------------------------------------------------------
def _fused_edm_kernel(c_hr, sigma_ref, arg_ref, emb_ref, wc1_ref, wc2_ref,
                      bc2_ref, o_ref):
    b = pl.program_id(0)

    # Per-batch EDM scalars from sigma (SMEM scalar read; same math as PyTorch).
    s = sigma_ref[b]
    denom = s * s + SIGMA_DATA * SIGMA_DATA
    sqrt_denom = jnp.sqrt(denom)
    c_in = 1.0 / sqrt_denom
    c_skip = (SIGMA_DATA * SIGMA_DATA) / denom
    c_out = s * SIGMA_DATA / sqrt_denom

    blk = arg_ref[0, 0]                      # (th+2, W+2, Cp) f32, zero halo + chan pad
    thp, wp, cp_in = blk.shape
    th, w_img = thp - 2, wp - 2
    hw = th * w_img
    hidden = wc1_ref.shape[2]
    assert wc2_ref.shape[1] == cp_in         # narrow output uses the same Cp lanes

    # c_in applies only to the noisy-HR channels [0, c_hr); LR conditioning untouched.
    cidx = jax.lax.broadcasted_iota(jnp.int32, (1, 1, cp_in), 2)
    scale = jnp.where(cidx < c_hr, c_in, 1.0)
    blk_bf = (blk * scale).astype(jnp.bfloat16)     # single fold-scale-into-cast

    # Hoist the 3 dx column shifts (the only relayout copies, bf16).  dy slices
    # on the leading (non-tiled) dim and the (th,W,Cp)->(HW,Cp) reshape are free
    # when W is a multiple of 8.
    cols = [blk_bf[:, dx:dx + w_img, :] for dx in range(3)]

    # conv3x3 as 9 per-tap accumulated GEMMs (bf16 MXU operands, f32 accumulate):
    # no 9x channel blow-up / im2col concat is ever materialized.
    acc = jnp.zeros((hw, hidden), jnp.float32)
    for dy in range(3):
        for dx in range(3):
            tap = cols[dx][dy:dy + th].reshape(hw, cp_in)
            acc += jnp.dot(tap, wc1_ref[dy * 3 + dx],
                           preferred_element_type=jnp.float32)

    # FiLM-style noise-embedding bias + SiLU (f32 on VPU/EUP; v5e has no bf16 VPU).
    hact = acc + emb_ref[0]
    hact = hact * jax.nn.sigmoid(hact)

    # conv1x1 as GEMM directly into the narrow Cp-wide output tile.
    fx = jnp.dot(hact.astype(jnp.bfloat16), wc2_ref[...],
                 preferred_element_type=jnp.float32) + bc2_ref[...]

    # EDM epilogue: D = c_skip * x + c_out * F_x on the UNSCALED interior block.
    # Lanes >= c_hr carry the LR conditioning through the skip path; the wrapper
    # slices out the first c_hr real channels.
    x_int = blk[1:1 + th, 1:1 + w_img, :].reshape(hw, cp_in)
    o_ref[0, 0] = c_skip * x_int + c_out * fx


def fused_forward_pallas(sigma, arg_tiles, emb, wc1, wc2, bc2, *, c_hr,
                         vmem_limit_bytes=32 * 1024 * 1024):
    B, n_tiles, thp, Wp, Cp = arg_tiles.shape
    th, W = thp - 2, Wp - 2
    hw = th * W
    hidden = wc1.shape[2]
    n_out = wc2.shape[1]
    kernel = functools.partial(_fused_edm_kernel, c_hr)
    return pl.pallas_call(
        kernel,
        out_shape=jax.ShapeDtypeStruct((B, n_tiles, hw, n_out), jnp.float32),
        grid=(B, n_tiles),
        in_specs=[
            # Per-batch sigma scalars (constant block index -> copied once).
            pl.BlockSpec((B,), lambda b, t: (0,),
                         memory_space=pltpu.MemorySpace.SMEM),
            # Pre-overlapped row tile with 1-row halo.
            pl.BlockSpec((1, 1, thp, Wp, Cp), lambda b, t: (b, t, 0, 0, 0)),
            # Noise-embedding FiLM bias (per batch).
            pl.BlockSpec((1, 1, hidden), lambda b, t: (b, 0, 0)),
            # Weights: constant block indices -> stay VMEM-resident across steps.
            pl.BlockSpec((9, Cp, hidden), lambda b, t: (0, 0, 0)),
            pl.BlockSpec((hidden, n_out), lambda b, t: (0, 0)),
            pl.BlockSpec((1, n_out), lambda b, t: (0, 0)),
        ],
        out_specs=pl.BlockSpec((1, 1, hw, n_out), lambda b, t: (b, t, 0, 0)),
        compiler_params=pltpu.CompilerParams(
            # batch x row-tile axes both parallel -> both TCs on v7x even at B=1.
            dimension_semantics=("parallel", "parallel"),
            # 32 MiB is safe on v7x (64 MiB physical); bump to ~64-100 MiB on
            # v6e/v5e together with a larger vmem_budget_bytes (bigger row tiles).
            vmem_limit_bytes=vmem_limit_bytes,
        ),
    )(sigma, arg_tiles, emb, wc1, wc2, bc2)


def _pick_tile_rows(H, W, Cp, hidden, vmem_budget_bytes):
    """Largest row tile that divides H and fits a rough per-step VMEM budget."""
    per_row = W * (
        2 * 4 * Cp      # double-buffered f32 input block
        + 2 * Cp        # bf16 scaled block
        + 3 * 2 * Cp    # 3 dx-shifted bf16 copies
        + 4 * hidden    # f32 conv3x3 accumulator
        + 2 * hidden    # bf16 hidden activation
        + 4 * Cp        # f32 conv1x1 output
        + 4 * Cp        # f32 skip-path interior
        + 2 * 4 * Cp    # double-buffered f32 output block
    )
    max_rows = max(1, vmem_budget_bytes // max(per_row, 1))
    best = 1
    for d in range(1, H + 1):
        if H % d == 0 and d <= max_rows:
            best = d
    return best


# ----------------------------------------------------------------------------
# Surrogate-model parameters & tiny noise-embedding MLP (plain XLA)
# ----------------------------------------------------------------------------
def init_params(key, c_hr, c_lr, hidden=32):
    c_total = c_hr + c_lr
    cp = ((c_total + 7) // 8) * 8             # pad channels to sublane-friendly 8
    k1, k2, k3, k4, k5 = jax.random.split(key, 5)
    wc1 = 0.05 * jax.random.normal(k1, (9, cp, hidden), jnp.float32)
    wc1 = wc1.at[:, c_total:, :].set(0.0)     # zero rows for padded input channels
    wc2 = 0.05 * jax.random.normal(k2, (hidden, cp), jnp.float32)
    wc2 = wc2.at[:, c_hr:].set(0.0)           # only first c_hr output lanes are real
    return {
        "cp": cp,
        "hidden": hidden,
        "wc1": wc1.astype(jnp.bfloat16),      # (9, Cp, hidden) per-tap conv3x3 weights
        "wc2": wc2.astype(jnp.bfloat16),      # (hidden, Cp) conv1x1 weights
        "bc2": jnp.zeros((1, cp), jnp.float32),
        "we1": 0.05 * jax.random.normal(k3, (8, hidden), jnp.float32),
        "be1": jnp.zeros((hidden,), jnp.float32),
        "we2": 0.05 * jax.random.normal(k4, (hidden, hidden), jnp.float32),
        "be2": 0.01 * jax.random.normal(k5, (hidden,), jnp.float32),
    }


def noise_embedding_xla(c_noise, params):
    # TODO(synk): placeholder for the real Fourier/positional noise embedding.
    B = c_noise.shape[0]
    feat = jnp.zeros((B, 8), jnp.float32).at[:, 0].set(c_noise)
    h = feat @ params["we1"] + params["be1"]
    h = h * jax.nn.sigmoid(h)
    return h @ params["we2"] + params["be2"]          # (B, hidden)


# ----------------------------------------------------------------------------
# Public forward: mirrors EDMPrecondSuperResolution.forward (fp32 path)
# ----------------------------------------------------------------------------
def edm_precond_superres_forward(x_nchw, img_lr_nchw, sigma, params, *,
                                 tile_rows=None, vmem_budget_bytes=20 << 20):
    x = jnp.transpose(x_nchw.astype(jnp.float32), (0, 2, 3, 1))          # NHWC
    img_lr = jnp.transpose(img_lr_nchw.astype(jnp.float32), (0, 2, 3, 1))
    sigma = sigma.astype(jnp.float32).reshape(-1)                        # (B,)

    B, H, W, c_hr = x.shape
    c_lr = img_lr.shape[-1]
    cp = params["cp"]
    hidden = params["hidden"]

    if tile_rows is None:
        tile_rows = _pick_tile_rows(H, W, cp, hidden, vmem_budget_bytes)
    assert H % tile_rows == 0
    n_tiles = H // tile_rows

    # arg = cat([x, img_lr]) with a 1-pixel zero halo (3x3 "same" conv) and
    # channel zero-pad to Cp; the c_in scaling of the x channels happens in-kernel.
    arg = jnp.concatenate([x, img_lr], axis=-1)
    arg_pad = jnp.pad(arg, ((0, 0), (1, 1), (1, 1), (0, cp - (c_hr + c_lr))))
    # Pre-overlapped row tiles with 1-row halos: (B, n_tiles, tile_rows+2, W+2, Cp).
    arg_tiles = jnp.stack(
        [arg_pad[:, t * tile_rows: t * tile_rows + tile_rows + 2]
         for t in range(n_tiles)], axis=1)

    c_noise = jnp.log(sigma) / 4.0
    emb = noise_embedding_xla(c_noise, params).reshape(B, 1, hidden)

    out = fused_forward_pallas(sigma, arg_tiles, emb, params["wc1"],
                               params["wc2"], params["bc2"], c_hr=c_hr)
    # (B, n_tiles, tile_rows*W, Cp) -> (B, H, W, c_hr): row tiles stack in order.
    D = out.reshape(B, H, W, cp)[..., :c_hr]
    return jnp.transpose(D, (0, 3, 1, 2))                                # NCHW


if __name__ == "__main__":
    key = jax.random.PRNGKey(0)
    B, C_hr, C_lr, H, W = 2, 4, 3, 16, 16
    kx, klr, ks, kp = jax.random.split(key, 4)

    x = jax.random.normal(kx, (B, C_hr, H, W), jnp.float32)        # noisy HR image
    img_lr = jax.random.normal(klr, (B, C_lr, H, W), jnp.float32)  # LR conditioning
    sigma = jnp.exp(jax.random.normal(ks, (B,), jnp.float32))      # positive noise levels

    params = init_params(kp, C_hr, C_lr, hidden=32)

    # tile_rows=8 exercises the (batch, row-tile) grid (2 row tiles per image).
    fwd = jax.jit(functools.partial(edm_precond_superres_forward,
                                    params=params, tile_rows=8))
    out = fwd(x, img_lr, sigma)
    jax.block_until_ready(out)

    assert out.shape == (B, C_hr, H, W)
    assert out.dtype == jnp.float32
    assert bool(jnp.all(jnp.isfinite(out)))
    print("KERNEL_OK")
</pallas_src>

<mosaic_0001>
module attributes {stable_mosaic.version = 11 : i64} {
  func.func @_fused_edm_kernel(%arg0: i32, %arg1: i32, %arg2: memref<2xf32, #tpu.memory_space<smem>>, %arg3: memref<1x1x10x18x8xf32, #tpu.memory_space<vmem>>, %arg4: memref<1x1x32xf32, #tpu.memory_space<vmem>>, %arg5: memref<9x8x32xbf16, #tpu.memory_space<vmem>>, %arg6: memref<32x8xbf16, #tpu.memory_space<vmem>>, %arg7: memref<1x8xf32, #tpu.memory_space<vmem>>, %arg8: memref<1x1x128x8xf32, #tpu.memory_space<vmem>>) attributes {dimension_semantics = [#tpu.dimension_semantics<parallel>, #tpu.dimension_semantics<parallel>], iteration_bounds = array<i64: 2, 2>, scalar_prefetch = 0 : i64, scratch_operands = 0 : i64, tpu.core_type = #tpu.core_type<tc>, window_params = [{transform_indices = @transform_0, window_bounds = array<i64: 2>}, {transform_indices = @transform_1, window_bounds = array<i64: 1, 1, 10, 18, 8>}, {transform_indices = @transform_2, window_bounds = array<i64: 1, 1, 32>}, {pipeline_mode = #tpu.pipeline_mode<synchronous>, transform_indices = @transform_3, window_bounds = array<i64: 9, 8, 32>}, {pipeline_mode = #tpu.pipeline_mode<synchronous>, transform_indices = @transform_4, window_bounds = array<i64: 32, 8>}, {pipeline_mode = #tpu.pipeline_mode<synchronous>, transform_indices = @transform_5, window_bounds = array<i64: 1, 8>}, {transform_indices = @transform_6, window_bounds = array<i64: 1, 1, 128, 8>}]} {
    %0 = arith.index_cast %arg0 : i32 to index
    %1 = memref.load %arg2[%0] : memref<2xf32, #tpu.memory_space<smem>>
    %2 = arith.mulf %1, %1 : f32
    %cst = arith.constant 2.500000e-01 : f32
    %3 = arith.addf %2, %cst : f32
    %4 = math.sqrt %3 : f32
    %cst_0 = arith.constant 1.000000e+00 : f32
    %5 = arith.divf %cst_0, %4 : f32
    %cst_1 = arith.constant 2.500000e-01 : f32
    %6 = arith.divf %cst_1, %3 : f32
    %cst_2 = arith.constant 5.000000e-01 : f32
    %7 = arith.mulf %1, %cst_2 : f32
    %8 = arith.divf %7, %4 : f32
    %c0 = arith.constant 0 : index
    %c0_3 = arith.constant 0 : index
    %c0_4 = arith.constant 0 : index
    %c0_5 = arith.constant 0 : index
    %c0_6 = arith.constant 0 : index
    %9 = vector.load %arg3[%c0, %c0_3, %c0_4, %c0_5, %c0_6] : memref<1x1x10x18x8xf32, #tpu.memory_space<vmem>>, vector<1x1x10x18x8xf32>
    %10 = vector.shape_cast %9 : vector<1x1x10x18x8xf32> to vector<10x18x8xf32>
    %11 = tpu.iota {dimensions = array<i32: 2>} : vector<1x1x8xi32>
    %c4_i32 = arith.constant 4 : i32
    %12 = vector.broadcast %c4_i32 : i32 to vector<1x1x8xi32>
    %13 = arith.cmpi slt, %11, %12 : vector<1x1x8xi32>
    %cst_7 = arith.constant 1.000000e+00 : f32
    %14 = vector.broadcast %5 : f32 to vector<1x1x8xf32>
    %15 = vector.broadcast %cst_7 : f32 to vector<1x1x8xf32>
    %16 = arith.select %13, %14, %15 : vector<1x1x8xi1>, vector<1x1x8xf32>
    %17 = vector.broadcast %16 : vector<1x1x8xf32> to vector<10x18x8xf32>
    %18 = arith.mulf %10, %17 : vector<10x18x8xf32>
    %19 = arith.truncf %18 : vector<10x18x8xf32> to vector<10x18x8xbf16>
    %20 = vector.extract_strided_slice %19 {offsets = [0, 0, 0], sizes = [10, 16, 8], strides = [1, 1, 1]} : vector<10x18x8xbf16> to vector<10x16x8xbf16>
    %21 = vector.extract_strided_slice %19 {offsets = [0, 1, 0], sizes = [10, 16, 8], strides = [1, 1, 1]} : vector<10x18x8xbf16> to vector<10x16x8xbf16>
    %22 = vector.extract_strided_slice %19 {offsets = [0, 2, 0], sizes = [10, 16, 8], strides = [1, 1, 1]} : vector<10x18x8xbf16> to vector<10x16x8xbf16>
    %cst_8 = arith.constant 0.000000e+00 : f32
    %23 = vector.broadcast %cst_8 : f32 to vector<128x32xf32>
    %24 = vector.extract_strided_slice %20 {offsets = [0, 0, 0], sizes = [8, 16, 8], strides = [1, 1, 1]} : vector<10x16x8xbf16> to vector<8x16x8xbf16>
    %25 = vector.shape_cast %24 : vector<8x16x8xbf16> to vector<128x8xbf16>
    %c0_9 = arith.constant 0 : index
    %c0_10 = arith.constant 0 : index
    %c0_11 = arith.constant 0 : index
    %26 = vector.load %arg5[%c0_9, %c0_10, %c0_11] : memref<9x8x32xbf16, #tpu.memory_space<vmem>>, vector<1x8x32xbf16>
    %27 = vector.shape_cast %26 : vector<1x8x32xbf16> to vector<8x32xbf16>
    %cst_12 = arith.constant dense<0.000000e+00> : vector<128x32xf32>
    %28 = tpu.matmul %25, %27, %cst_12 {dimension_numbers = #tpu.dot_dimension_numbers<[1], [0], [0], [1], [0, 0, 1, 1], [], []>} : vector<128x8xbf16>, vector<8x32xbf16>, vector<128x32xf32> -> vector<128x32xf32>
    %29 = arith.addf %23, %28 : vector<128x32xf32>
    %30 = vector.extract_strided_slice %21 {offsets = [0, 0, 0], sizes = [8, 16, 8], strides = [1, 1, 1]} : vector<10x16x8xbf16> to vector<8x16x8xbf16>
    %31 = vector.shape_cast %30 : vector<8x16x8xbf16> to vector<128x8xbf16>
    %c1 = arith.constant 1 : index
    %c0_13 = arith.constant 0 : index
    %c0_14 = arith.constant 0 : index
    %32 = vector.load %arg5[%c1, %c0_13, %c0_14] : memref<9x8x32xbf16, #tpu.memory_space<vmem>>, vector<1x8x32xbf16>
    %33 = vector.shape_cast %32 : vector<1x8x32xbf16> to vector<8x32xbf16>
    %cst_15 = arith.constant dense<0.000000e+00> : vector<128x32xf32>
    %34 = tpu.matmul %31, %33, %cst_15 {dimension_numbers = #tpu.dot_dimension_numbers<[1], [0], [0], [1], [0, 0, 1, 1], [], []>} : vector<128x8xbf16>, vector<8x32xbf16>, vector<128x32xf32> -> vector<128x32xf32>
    %35 = arith.addf %29, %34 : vector<128x32xf32>
    %36 = vector.extract_strided_slice %22 {offsets = [0, 0, 0], sizes = [8, 16, 8], strides = [1, 1, 1]} : vector<10x16x8xbf16> to vector<8x16x8xbf16>
    %37 = vector.shape_cast %36 : vector<8x16x8xbf16> to vector<128x8xbf16>
    %c2 = arith.constant 2 : index
    %c0_16 = arith.constant 0 : index
    %c0_17 = arith.constant 0 : index
    %38 = vector.load %arg5[%c2, %c0_16, %c0_17] : memref<9x8x32xbf16, #tpu.memory_space<vmem>>, vector<1x8x32xbf16>
    %39 = vector.shape_cast %38 : vector<1x8x32xbf16> to vector<8x32xbf16>
    %cst_18 = arith.constant dense<0.000000e+00> : vector<128x32xf32>
    %40 = tpu.matmul %37, %39, %cst_18 {dimension_numbers = #tpu.dot_dimension_numbers<[1], [0], [0], [1], [0, 0, 1, 1], [], []>} : vector<128x8xbf16>, vector<8x32xbf16>, vector<128x32xf32> -> vector<128x32xf32>
    %41 = arith.addf %35, %40 : vector<128x32xf32>
    %42 = vector.extract_strided_slice %20 {offsets = [1, 0, 0], sizes = [8, 16, 8], strides = [1, 1, 1]} : vector<10x16x8xbf16> to vector<8x16x8xbf16>
    %43 = vector.shape_cast %42 : vector<8x16x8xbf16> to vector<128x8xbf16>
    %c3 = arith.constant 3 : index
    %c0_19 = arith.constant 0 : index
    %c0_20 = arith.constant 0 : index
    %44 = vector.load %arg5[%c3, %c0_19, %c0_20] : memref<9x8x32xbf16, #tpu.memory_space<vmem>>, vector<1x8x32xbf16>
    %45 = vector.shape_cast %44 : vector<1x8x32xbf16> to vector<8x32xbf16>
    %cst_21 = arith.constant dense<0.000000e+00> : vector<128x32xf32>
    %46 = tpu.matmul %43, %45, %cst_21 {dimension_numbers = #tpu.dot_dimension_numbers<[1], [0], [0], [1], [0, 0, 1, 1], [], []>} : vector<128x8xbf16>, vector<8x32xbf16>, vector<128x32xf32> -> vector<128x32xf32>
    %47 = arith.addf %41, %46 : vector<128x32xf32>
    %48 = vector.extract_strided_slice %21 {offsets = [1, 0, 0], sizes = [8, 16, 8], strides = [1, 1, 1]} : vector<10x16x8xbf16> to vector<8x16x8xbf16>
    %49 = vector.shape_cast %48 : vector<8x16x8xbf16> to vector<128x8xbf16>
    %c4 = arith.constant 4 : index
    %c0_22 = arith.constant 0 : index
    %c0_23 = arith.constant 0 : index
    %50 = vector.load %arg5[%c4, %c0_22, %c0_23] : memref<9x8x32xbf16, #tpu.memory_space<vmem>>, vector<1x8x32xbf16>
    %51 = vector.shape_cast %50 : vector<1x8x32xbf16> to vector<8x32xbf16>
    %cst_24 = arith.constant dense<0.000000e+00> : vector<128x32xf32>
    %52 = tpu.matmul %49, %51, %cst_24 {dimension_numbers = #tpu.dot_dimension_numbers<[1], [0], [0], [1], [0, 0, 1, 1], [], []>} : vector<128x8xbf16>, vector<8x32xbf16>, vector<128x32xf32> -> vector<128x32xf32>
    %53 = arith.addf %47, %52 : vector<128x32xf32>
    %54 = vector.extract_strided_slice %22 {offsets = [1, 0, 0], sizes = [8, 16, 8], strides = [1, 1, 1]} : vector<10x16x8xbf16> to vector<8x16x8xbf16>
    %55 = vector.shape_cast %54 : vector<8x16x8xbf16> to vector<128x8xbf16>
    %c5 = arith.constant 5 : index
    %c0_25 = arith.constant 0 : index
    %c0_26 = arith.constant 0 : index
    %56 = vector.load %arg5[%c5, %c0_25, %c0_26] : memref<9x8x32xbf16, #tpu.memory_space<vmem>>, vector<1x8x32xbf16>
    %57 = vector.shape_cast %56 : vector<1x8x32xbf16> to vector<8x32xbf16>
    %cst_27 = arith.constant dense<0.000000e+00> : vector<128x32xf32>
    %58 = tpu.matmul %55, %57, %cst_27 {dimension_numbers = #tpu.dot_dimension_numbers<[1], [0], [0], [1], [0, 0, 1, 1], [], []>} : vector<128x8xbf16>, vector<8x32xbf16>, vector<128x32xf32> -> vector<128x32xf32>
    %59 = arith.addf %53, %58 : vector<128x32xf32>
    %60 = vector.extract_strided_slice %20 {offsets = [2, 0, 0], sizes = [8, 16, 8], strides = [1, 1, 1]} : vector<10x16x8xbf16> to vector<8x16x8xbf16>
    %61 = vector.shape_cast %60 : vector<8x16x8xbf16> to vector<128x8xbf16>
    %c6 = arith.constant 6 : index
    %c0_28 = arith.constant 0 : index
    %c0_29 = arith.constant 0 : index
    %62 = vector.load %arg5[%c6, %c0_28, %c0_29] : memref<9x8x32xbf16, #tpu.memory_space<vmem>>, vector<1x8x32xbf16>
    %63 = vector.shape_cast %62 : vector<1x8x32xbf16> to vector<8x32xbf16>
    %cst_30 = arith.constant dense<0.000000e+00> : vector<128x32xf32>
    %64 = tpu.matmul %61, %63, %cst_30 {dimension_numbers = #tpu.dot_dimension_numbers<[1], [0], [0], [1], [0, 0, 1, 1], [], []>} : vector<128x8xbf16>, vector<8x32xbf16>, vector<128x32xf32> -> vector<128x32xf32>
    %65 = arith.addf %59, %64 : vector<128x32xf32>
    %66 = vector.extract_strided_slice %21 {offsets = [2, 0, 0], sizes = [8, 16, 8], strides = [1, 1, 1]} : vector<10x16x8xbf16> to vector<8x16x8xbf16>
    %67 = vector.shape_cast %66 : vector<8x16x8xbf16> to vector<128x8xbf16>
    %c7 = arith.constant 7 : index
    %c0_31 = arith.constant 0 : index
    %c0_32 = arith.constant 0 : index
    %68 = vector.load %arg5[%c7, %c0_31, %c0_32] : memref<9x8x32xbf16, #tpu.memory_space<vmem>>, vector<1x8x32xbf16>
    %69 = vector.shape_cast %68 : vector<1x8x32xbf16> to vector<8x32xbf16>
    %cst_33 = arith.constant dense<0.000000e+00> : vector<128x32xf32>
    %70 = tpu.matmul %67, %69, %cst_33 {dimension_numbers = #tpu.dot_dimension_numbers<[1], [0], [0], [1], [0, 0, 1, 1], [], []>} : vector<128x8xbf16>, vector<8x32xbf16>, vector<128x32xf32> -> vector<128x32xf32>
    %71 = arith.addf %65, %70 : vector<128x32xf32>
    %72 = vector.extract_strided_slice %22 {offsets = [2, 0, 0], sizes = [8, 16, 8], strides = [1, 1, 1]} : vector<10x16x8xbf16> to vector<8x16x8xbf16>
    %73 = vector.shape_cast %72 : vector<8x16x8xbf16> to vector<128x8xbf16>
    %c8 = arith.constant 8 : index
    %c0_34 = arith.constant 0 : index
    %c0_35 = arith.constant 0 : index
    %74 = vector.load %arg5[%c8, %c0_34, %c0_35] : memref<9x8x32xbf16, #tpu.memory_space<vmem>>, vector<1x8x32xbf16>
    %75 = vector.shape_cast %74 : vector<1x8x32xbf16> to vector<8x32xbf16>
    %cst_36 = arith.constant dense<0.000000e+00> : vector<128x32xf32>
    %76 = tpu.matmul %73, %75, %cst_36 {dimension_numbers = #tpu.dot_dimension_numbers<[1], [0], [0], [1], [0, 0, 1, 1], [], []>} : vector<128x8xbf16>, vector<8x32xbf16>, vector<128x32xf32> -> vector<128x32xf32>
    %77 = arith.addf %71, %76 : vector<128x32xf32>
    %c0_37 = arith.constant 0 : index
    %c0_38 = arith.constant 0 : index
    %c0_39 = arith.constant 0 : index
    %78 = vector.load %arg4[%c0_37, %c0_38, %c0_39] : memref<1x1x32xf32, #tpu.memory_space<vmem>>, vector<1x1x32xf32>
    %79 = vector.shape_cast %78 : vector<1x1x32xf32> to vector<1x32xf32>
    %80 = vector.broadcast %79 : vector<1x32xf32> to vector<128x32xf32>
    %81 = arith.addf %77, %80 : vector<128x32xf32>
    %82 = arith.negf %81 : vector<128x32xf32>
    %83 = math.exp %82 : vector<128x32xf32>
    %cst_40 = arith.constant 1.000000e+00 : f32
    %84 = vector.broadcast %cst_40 : f32 to vector<128x32xf32>
    %85 = arith.addf %84, %83 : vector<128x32xf32>
    %86 = arith.divf %84, %85 : vector<128x32xf32>
    %87 = arith.mulf %81, %86 : vector<128x32xf32>
    %88 = arith.truncf %87 : vector<128x32xf32> to vector<128x32xbf16>
    %c0_41 = arith.constant 0 : index
    %c0_42 = arith.constant 0 : index
    %89 = vector.load %arg6[%c0_41, %c0_42] : memref<32x8xbf16, #tpu.memory_space<vmem>>, vector<32x8xbf16>
    %cst_43 = arith.constant dense<0.000000e+00> : vector<128x8xf32>
    %90 = tpu.matmul %88, %89, %cst_43 {dimension_numbers = #tpu.dot_dimension_numbers<[1], [0], [0], [1], [0, 0, 1, 1], [], []>} : vector<128x32xbf16>, vector<32x8xbf16>, vector<128x8xf32> -> vector<128x8xf32>
    %c0_44 = arith.constant 0 : index
    %c0_45 = arith.constant 0 : index
    %91 = vector.load %arg7[%c0_44, %c0_45] : memref<1x8xf32, #tpu.memory_space<vmem>>, vector<1x8xf32>
    %92 = vector.broadcast %91 : vector<1x8xf32> to vector<128x8xf32>
    %93 = arith.addf %90, %92 : vector<128x8xf32>
    %94 = vector.extract_strided_slice %10 {offsets = [1, 1, 0], sizes = [8, 16, 8], strides = [1, 1, 1]} : vector<10x18x8xf32> to vector<8x16x8xf32>
    %95 = vector.shape_cast %94 : vector<8x16x8xf32> to vector<128x8xf32>
    %96 = vector.broadcast %6 : f32 to vector<128x8xf32>
    %97 = arith.mulf %96, %95 : vector<128x8xf32>
    %98 = vector.broadcast %8 : f32 to vector<128x8xf32>
    %99 = arith.mulf %98, %93 : vector<128x8xf32>
    %100 = arith.addf %97, %99 : vector<128x8xf32>
    %c0_46 = arith.constant 0 : index
    %c0_47 = arith.constant 0 : index
    %c0_48 = arith.constant 0 : index
    %c0_49 = arith.constant 0 : index
    %101 = vector.load %arg8[%c0_46, %c0_47, %c0_48, %c0_49] : memref<1x1x128x8xf32, #tpu.memory_space<vmem>>, vector<1x1x128x8xf32>
    %102 = vector.shape_cast %101 : vector<1x1x128x8xf32> to vector<128x8xf32>
    %103 = vector.shape_cast %100 : vector<128x8xf32> to vector<1x1x128x8xf32>
    tpu.vector_store %arg8[%c0_46, %c0_47, %c0_48, %c0_49], %103 {strides = array<i32>} : memref<1x1x128x8xf32, #tpu.memory_space<vmem>>, vector<1x1x128x8xf32>,
    return
  }
  func.func @transform_0(%arg0: i32, %arg1: i32) -> i32 {
    %c0_i32 = arith.constant 0 : i32
    %c0_i32_0 = arith.constant 0 : i32
    return %c0_i32 : i32
  }
  func.func @transform_1(%arg0: i32, %arg1: i32) -> (i32, i32, i32, i32, i32) {
    %c0_i32 = arith.constant 0 : i32
    %c0_i32_0 = arith.constant 0 : i32
    %c0_i32_1 = arith.constant 0 : i32
    %c0_i32_2 = arith.constant 0 : i32
    return %arg0, %arg1, %c0_i32, %c0_i32_0, %c0_i32_1 : i32, i32, i32, i32, i32
  }
  func.func @transform_2(%arg0: i32, %arg1: i32) -> (i32, i32, i32) {
    %c0_i32 = arith.constant 0 : i32
    %c0_i32_0 = arith.constant 0 : i32
    %c0_i32_1 = arith.constant 0 : i32
    return %arg0, %c0_i32, %c0_i32_0 : i32, i32, i32
  }
  func.func @transform_3(%arg0: i32, %arg1: i32) -> (i32, i32, i32) {
    %c0_i32 = arith.constant 0 : i32
    %c0_i32_0 = arith.constant 0 : i32
    %c0_i32_1 = arith.constant 0 : i32
    %c0_i32_2 = arith.constant 0 : i32
    return %c0_i32, %c0_i32_0, %c0_i32_1 : i32, i32, i32
  }
  func.func @transform_4(%arg0: i32, %arg1: i32) -> (i32, i32) {
    %c0_i32 = arith.constant 0 : i32
    %c0_i32_0 = arith.constant 0 : i32
    %c0_i32_1 = arith.constant 0 : i32
    return %c0_i32, %c0_i32_0 : i32, i32
  }
  func.func @transform_5(%arg0: i32, %arg1: i32) -> (i32, i32) {
    %c0_i32 = arith.constant 0 : i32
    %c0_i32_0 = arith.constant 0 : i32
    %c0_i32_1 = arith.constant 0 : i32
    return %c0_i32, %c0_i32_0 : i32, i32
  }
  func.func @transform_6(%arg0: i32, %arg1: i32) -> (i32, i32, i32, i32) {
    %c0_i32 = arith.constant 0 : i32
    %c0_i32_0 = arith.constant 0 : i32
    %c0_i32_1 = arith.constant 0 : i32
    return %arg0, %arg1, %c0_i32, %c0_i32_0 : i32, i32, i32, i32
  }
}

</mosaic_0001>

<bundles_post_ra>
// kernel: edm_precond_superres_forward.1
= control target key start
LH: loop header
LB: loop body
LE: loop exit
PB: predicated region body
PF: predicated region fallthrough
CT: control target
= control target key end

     0   :  { %11 = vsyncpa [#allocation3], 0  ;;  %s3018_s21 = smov 0   ;;  %s3020_s22 = smov 0   ;;  %s3829_s0 = inlined_call_operand.vmem [shape: f32[2], index: 0, kind: input, shape index: {}]   ;;  %s3830_s1 = inlined_call_operand.vmem [shape: f32[2,2,10,18,8], index: 1, kind: input, shape index: {}]   ;;  %s3831_s2 = inlined_call_operand.vmem [shape: f32[2,1,32], index: 2, kind: input, shape index: {}]   ;;  %s3832_s3 = inlined_call_operand.vmem [shape: bf16[9,8,32], index: 3, kind: input, shape index: {}]   ;;  %s3833_s4 = inlined_call_operand.vmem [shape: bf16[32,8], index: 4, kind: input, shape index: {}]   ;;  %s3834_s5 = inlined_call_operand.vmem [shape: f32[1,8], index: 5, kind: input, shape index: {}]   ;;  %s3835_s6 = inlined_call_operand.vmem [shape: f32[2,2,128,8], index: 6, kind: output, shape index: {}]  }
   0x1   :  { %s3022_s23 = smov 0   ;;  %s3024_s24 = smov 0  }
   0x2   :  { %s3026_s25 = smov 0  }
   0x3 LB: > { %s2261_s26 = sadd.s32 4294967295, %s2980_s25   ;;  %s26_s27 = sadd.s32 1, %s2972_s23  ;;  %s2980_s25 = sphi %s3026_s25, %s17_s25   ;;  %s2976_s24 = sphi %s3024_s24, %s3853_s24   ;;  %s2972_s23 = sphi %s3022_s23, %s3852_s23   ;;  %s2968_s22 = sphi %s3020_s22, %s3851_s22   ;;  %s2964_s21 = sphi %s3018_s21, %s3850_s21  }
   0x4   : > { %p27_p0 = scmp.ge.s32.totalorder %s26_s27, 2  ;;  %s29_s28 = sadd.s32 1, %s2976_s24 }
   0x5   : > { %p2263_p1 = scmp.ge.s32.totalorder %s2980_s25, 1  ;;  %p200_p2 = scmp.lt.s32.totalorder %s2980_s25, 5 }
   0x6   : > { %s3855_s27 = smov (%p27_p0, %s26_s27), 0  ;;  %s3857_s28 = smov (!%p27_p0, %s29_s28), %s2976_s24 }
   0x7   : > { %p3051_p3 = pnand %p2263_p1, %p200_p2  ;;  %p31_p4 = scmp.ge.s32.totalorder %s3857_s28, 2 }
   0x8   : > { %p3055_p5 = scmp.eq.s32.totalorder %s2261_s26, 0  ;;  %s213_s9 = sshll.u32 %s3829_s0, 4  ;;  %s214_s9 = int_to_ptr.vmem [resolvable:$true] %s213_s9 }
   0x9   : > { %p2804_p6 = pneg %p3051_p3  ;;  %s3859_s28 = smov (%p31_p4, %s3857_s28), 0 }
   0xa   : > { %s2923_s10 = scalar_lea.vmem %s214_s9, 16  ;;  %p2931_p12 = scmp.lt.s32.totalorder %s214_s9, %s214_s9 }
   0xb   : > { %p2805_p7 = pnand %p3055_p5, %p2804_p6  ;;  %p2924_p8 = scmp.ne.s32.totalorder %s214_s9, %s2923_s10 }
   0xc   : > { %p2932_p13 = scmp.lt.s32.totalorder %s2923_s10, %s2923_s10 }
   0xd   : > { %p2925_p9 = pneg %p2805_p7 }
   0xe   : > { %p2933_p0 = por %p2932_p13, %p2931_p12 }
   0xf   : > { %p2926_p10 = pnand %p2925_p9, %p2924_p8 }
  0x11   : > { %p2927_p11 = pneg %p2926_p10 }
  0x13   : > { %p2934_p1 = pnand %p2933_p0, %p2927_p11 }
  0x15   : > { %2937 = shalt.err (!%p2934_p1)
}
  0x16   : > { %s2982_s11 = smov [#allocation2]   ;;  %253 = sbr.rel (%p3051_p3) target bundleno = 810 (0x32a), region = 44 }
  0x17   : > { %2807 = dma.vmem_to_smem (!%p2805_p7), %s214_s9, 16, %s2982_s11, [#allocation3]  }
  0x1d   : > { %2959 = dma.done.wait (%p3055_p5), [#allocation3], 16  }
  0x1e   : > { %2961 = vsyncadd (%p3055_p5), [#allocation3], 4294967280 }
  0x1f   : > { %259 = sfence }
  0x20   : > { %s3075_s12 = sld [smem:[#allocation2 + %s2968_s22]]  ;;  %vm551_vm0 = vcmask 1043456   ;;  %v2307_v1 = vld [vmem:[%s3832_s3 + $0x10] sm:$0xf]  ;;  %v2272_v2 = vld [vmem:[%s3832_s3 + $0x4] sm:$0xf]  ;;  %v371_v14 = vlaneseq }
  0x21   : > { %2787 = vmatprep.subr.msk.bf16.mxu0 %vm551_vm0, %v2307_v1  ;;  %2783 = vmatprep.subr.msk.bf16.mxu1 %vm551_vm0, %v2272_v2  ;;  %v1089_v3 = vsel %vm551_vm0, %v2307_v1, 0  ;;  %v553_v4 = vsel %vm551_vm0, %v2272_v2, 0  ;;  %v2316_v9 = vld [vmem:[%s3832_s3 + $0x14] sm:$0xf]  ;;  %v426_v11 = vld [vmem:[%s3832_s3] sm:$0xf] }
  0x22   : > { %2546 = vmatpush3.bf16.msra.mxu0 %v1089_v3  ;;  %2474 = vmatpush3.bf16.msra.mxu1 %v553_v4  ;;  %p297_p2 = scmp.lt.s32.totalorder %s2964_s21, 1  ;;  %p295_p3 = scmp.lt.s32.totalorder %s2968_s22, 1  ;;  %v372_v15 = vand.u32 127, %v371_v14  ;;  %vm427_vm4 = vsmask.f32 7424  ;;  %vm526_vm5 = vcmask 64512  }
  0x23   : > { %2788 = vmatprep.subr.msk.bf16.mxu0 %vm551_vm0, %v2316_v9  ;;  %2784 = vmatprep.subr.msk.bf16.mxu1 %vm551_vm0, %v426_v11  ;;  %v3150_v30 = vsel %vm551_vm0, %v2316_v9, 0  ;;  %v3181_v44 = vsel %vm551_vm0, %v426_v11, 0  ;;  %vm784_vm6 = vcmask 1046528   ;;  %vm1875_vm7 = vcmask 261120  }
  0x24   : > { %s3861_s21 = smov (!%p297_p2, %s2964_s21), 1  ;;  %s3863_s22 = smov (!%p295_p3, %s2968_s22), 1  ;;  %vm373_vm3 = vcmp.lt.s32.totalorder %v372_v15, 4 }
  0x25   : > { %s2792_s7 = smul.u32 30, %s3861_s21  ;;  %s306_s17 = scalar_lea.vmem %s3831_s2, %s3863_s22 }
  0x26   : > { %s318_s13 = smul.f32 %s3075_s12, %s3075_s12  ;;  %s2269_s26 = sshll.u32 %s3861_s21, 4 }
  0x27   : > { %s2793_s8 = smul.u32 60, %s3863_s22  ;;  %s2270_s29 = sshll.u32 %s3863_s22, 5 }
  0x28   : > { %s319_s14 = sadd.f32 0.25, %s318_s13  ;;  %s336_s19 = smul.f32 0.5, %s3075_s12 }
  0x29   : > { %s301_s9 = sadd.s32 %s2793_s8, %s2792_s7  ;;  %s313_s12 = sadd.s32 %s2270_s29, %s2269_s26 }
  0x2a   : > { %v3079_v0 = vstv %s319_s14  ;;  %s2268_s10 = sshll.u32 %s301_s9, 3  ;;  %s2271_s21 = sshll.u32 %s313_s12, 3 }
  0x2b   : > { %2853 = vrsqrt.f32 %v3079_v0  ;;  %vm323_vm1 = vcmp.eq.f32.partialorder %v3079_v0, inf  ;;  %v326_v6 = vand.u32 2147483648, %v3079_v0  ;;  %vm325_vm2 = vcmp.eq.f32.partialorder %v3079_v0, 0.0  ;;  %s3118_s14 = scalar_lea.vmem %s3830_s1, %s2268_s10  ;;  %s3714_s9 = scalar_lea.vmem %s3835_s6, %s2271_s21 }
  0x2c   : > { %v341_v16 = vld [vmem:[%s3118_s14] sm:$0xff]  ;;  %v342_v17 = vld [vmem:[%s3118_s14 + $0x8] sm:$0xff]  ;;  %v343_v18 = vld [vmem:[%s3118_s14 + $0x10] sm:$0x3] }
  0x2d   : > { %v3126_v19 = vld [vmem:[%s3118_s14 + $0x18] sm:$0xff]  ;;  %v3130_v21 = vld [vmem:[%s3118_s14 + $0x20] sm:$0xff]  ;;  %v3133_v22 = vld [vmem:[%s3118_s14 + $0x28] sm:$0x3] }
  0x2e   : > { %v3136_v23 = vld [vmem:[%s3118_s14 + $0x30] sm:$0xff]  ;;  %v3141_v25 = vld [vmem:[%s3118_s14 + $0x38] sm:$0xff]  ;;  %v3144_v26 = vld [vmem:[%s3118_s14 + $0x40] sm:$0x3] }
  0x2f   : > { %v3153_v31 = vld [vmem:[%s3118_s14 + $0x48] sm:$0xff]  ;;  %v3164_v36 = vld [vmem:[%s3118_s14 + $0x50] sm:$0xff]  ;;  %v3195_v53 = vld [vmem:[%s3118_s14 + $0x58] sm:$0x3] }
  0x30   : > { %v3200_v58 = vld [vmem:[%s3118_s14 + $0x60] sm:$0xff]  ;;  %v3203_v59 = vld [vmem:[%s3118_s14 + $0x68] sm:$0xff] }
  0x31   : > { %v3222_v11 = vld [vmem:[%s3118_s14 + $0x80] sm:$0xff] }
  0x35   : > { %v2854_v5 = vpop.eup %2853 }
  0x36   : > { %v322_v7 = vmul.f32 %v2854_v5, %v3079_v0  ;;  %v3212_v5 = vld [vmem:[%s3118_s14 + $0x70] sm:$0x3] }
  0x38   : > { %v324_v8 = vsel %vm323_vm1, %v3079_v0, %v322_v7 }
  0x39   : > { %v327_v10 = vsel %vm325_vm2, %v326_v6, %v324_v8 }
  0x3a   : > { %2794 = vpush %v327_v10  ;;  %v3219_v10 = vld [vmem:[%s3118_s14 + $0x78] sm:$0xff] }
  0x6b   : > { %s2795_s30 = spop %2794 }
  0x6c   : > { %v329_v12 = vstv %s2795_s30 }
  0x6d   : > { %2855 = vrcp.f32 %v329_v12 }
  0x6e   : > { %2857 = vrcp.f32 %v3079_v0 }
  0x77   : > { %v2856_v13 = vpop.eup %2855 }
  0x78   : > { %2796 = vpush %v2856_v13 }
  0xa9   : > { %s3121_s15 = spop %2796 }
  0xaa   : > { %v374_v20 = vstv %s3121_s15  ;;  %s340_s30 = smul.f32 %s3121_s15, %s336_s19 }
  0xab   : > { %v3138_v24 = vsel %vm373_vm3, %v374_v20, 1.0 }
  0xac   : > { %v376_v27 = vmul.f32 %v3138_v24, %v341_v16  ;;  %v377_v28 = vmul.f32 %v3138_v24, %v342_v17  ;;  %v378_v29 = vmul.f32 %v3138_v24, %v343_v18  ;;  %v379_v32 = vmul.f32 %v3138_v24, %v3126_v19 }
  0xad   : > { %v380_v33 = vmul.f32 %v3138_v24, %v3130_v21  ;;  %v381_v34 = vmul.f32 %v3138_v24, %v3133_v22  ;;  %v382_v35 = vmul.f32 %v3138_v24, %v3136_v23  ;;  %v383_v39 = vmul.f32 %v3138_v24, %v3141_v25 }
  0xae   : > { %v3166_v37 = vpack.c.bf16 %v377_v28, %v376_v27  ;;  %v3168_v38 = vpack.c.bf16 %v378_v29, %v378_v29  ;;  %v384_v40 = vmul.f32 %v3138_v24, %v3144_v26  ;;  %v385_v43 = vmul.f32 %v3138_v24, %v3153_v31  ;;  %v3236_v27 = vld [vmem:[%s3118_s14 + $0x88] sm:$0x3]  ;;  %v3239_v28 = vld [vmem:[%s3118_s14 + $0x90] sm:$0xff] }
  0xaf   : > { %v3174_v41 = vpack.c.bf16 %v380_v33, %v379_v32  ;;  %v3176_v42 = vpack.c.bf16 %v381_v34, %v381_v34  ;;  %v3185_v47 = vpack.c.bf16 %v383_v39, %v382_v35  ;;  %v386_v48 = vmul.f32 %v3138_v24, %v3164_v36  ;;  %v3252_v35 = vld [vmem:[%s3118_s14 + $0x98] sm:$0xff] }
  0xb0   : > { %v431_v45 = vshll.u32 %v3166_v37, 16  ;;  %v436_v46 = vshll.u32 %v3168_v38, 16  ;;  %v429_v49 = vshrl.u32 %v3166_v37, 16  ;;  %v3192_v52 = vpack.c.bf16 %v384_v40, %v384_v40  ;;  %v3257_v39 = vld [vmem:[%s3832_s3 + $0x18] sm:$0xf] }
  0xb1   : > { %v443_v50 = vshll.u32 %v3174_v41, 16  ;;  %v448_v51 = vshll.u32 %v3176_v42, 16  ;;  %v441_v56 = vshrl.u32 %v3174_v41, 16  ;;  %v455_v57 = vshll.u32 %v3185_v47, 16  ;;  %v3262_v40 = vld [vmem:[%s3832_s3 + $0x8] sm:$0xf] }
  0xb2   : > { %v433_v54 = vrot.slane %v431_v45, 1  ;;  %v438_v55 = vrot.slane %v436_v46, 1  ;;  %v453_v62 = vshrl.u32 %v3185_v47, 16  ;;  %v460_v63 = vshll.u32 %v3192_v52, 16 }
  0xb3   : > { %v445_v60 = vrot.slane %v443_v50, 1  ;;  %v450_v61 = vrot.slane %v448_v51, 1  ;;  %v457_v2 = vrot.slane %v455_v57, 1  ;;  %v387_v3 = vmul.f32 %v3138_v24, %v3195_v53 }
  0xb4   : > { %v434_v1 = vor.u32 %v433_v54, %v429_v49  ;;  %v3209_v4 = vpack.c.bf16 %v386_v48, %v385_v43  ;;  %v462_v7 = vrot.slane %v460_v63, 1  ;;  %v388_v8 = vmul.f32 %v3138_v24, %v3200_v58  ;;  %v3273_v49 = vld [vmem:[%s3118_s14 + $0xa0] sm:$0x3] }
  0xb5   : > { %v446_v6 = vor.u32 %v445_v60, %v441_v56  ;;  %v389_v9 = vmul.f32 %v3138_v24, %v3203_v59  ;;  %v458_v13 = vor.u32 %v457_v2, %v453_v62  ;;  %v3225_v14 = vpack.c.bf16 %v387_v3, %v387_v3  ;;  %v3300_v2 = vld [vmem:[%s3118_s14 + $0xb0] sm:$0xff] }
  0xb6   : > { %v439_v12 = vsel %vm427_vm4, %v434_v1, %v438_v55  ;;  %v465_v15 = vshrl.u32 %v3209_v4, 16  ;;  %v467_v17 = vshll.u32 %v3209_v4, 16  ;;  %v390_v18 = vmul.f32 %v3138_v24, %v3212_v5  ;;  %3843 = vst [vmem:[#allocation6_spill] sm:$0xff] %v3300_v2 }
  0xb7   : > { %2475 = vmatprep.mubr.msk.bf16.mxu1 %vm526_vm5, %v439_v12  ;;  %v451_v16 = vsel %vm427_vm4, %v446_v6, %v450_v61  ;;  %v3233_v20 = vpack.c.bf16 %v389_v9, %v388_v8  ;;  %v3244_v29 = vsel %vm427_vm4, %v458_v13, %v462_v7  ;;  %v472_v32 = vshll.u32 %v3225_v14, 16  ;;  %v3287_v61 = vld [vmem:[%s3118_s14 + $0xa8] sm:$0xff]  ;;  %v3308_v9 = vld [vmem:[%s3118_s14 + $0xb8] sm:$0x3] }
  0xb8   : > { %2547 = vmatprep.mubr.msk.bf16.mxu0 %vm526_vm5, %v451_v16  ;;  %2476 = vmatmul.mubr.msk.bf16.vlgmr.msra.gmra.mrb[0].mxu1 %vm526_vm5, %v451_v16  ;;  %v391_v33 = vmul.f32 %v3138_v24, %v3219_v10  ;;  %v392_v34 = vmul.f32 %v3138_v24, %v3222_v11  ;;  %v469_v43 = vrot.slane %v467_v17, 1  ;;  %v3268_v45 = vpack.c.bf16 %v390_v18, %v390_v18  ;;  %v3318_v17 = vld [vmem:[%s3118_s14 + $0xc0] sm:$0xff]  ;;  %v3321_v18 = vld [vmem:[%s3118_s14 + $0xc8] sm:$0xff] }
  0xb9   : > { %2548 = vmatmul.mubr.msk.bf16.vlgmr.msra.gmra.mrb[0].mxu0 %vm526_vm5, %v3244_v29  ;;  %2479 = vmatprep.mubr.msk.bf16.mxu1 %vm526_vm5, %v3244_v29  ;;  %v477_v46 = vshrl.u32 %v3233_v20, 16  ;;  %v479_v48 = vshll.u32 %v3233_v20, 16  ;;  %v474_v50 = vrot.slane %v472_v32, 1  ;;  %v393_v51 = vmul.f32 %v3138_v24, %v3236_v27  ;;  %3842 = vst [vmem:[#allocation5_spill] sm:$0xff] %v3287_v61  ;;  %3844 = vst [vmem:[#allocation7_spill] sm:$0xff] %v3308_v9 }
  0xba   : > { %2564 = vmatpush3.bf16.msra.mxu0 %v3150_v30  ;;  %v3278_v54 = vpack.c.bf16 %v392_v34, %v391_v33  ;;  %v394_v55 = vmul.f32 %v3138_v24, %v3239_v28  ;;  %2492 = vmatpush3.bf16.msra.mxu1 %v3181_v44  ;;  %v470_v56 = vor.u32 %v469_v43, %v465_v15  ;;  %v484_v60 = vshll.u32 %v3268_v45, 16  ;;  %v3330_v43 = vld [vmem:[%s3118_s14 + $0xd0] sm:$0x3] }
  0xbb   : > { %v481_v57 = vrot.slane %v479_v48, 1  ;;  %v395_v30 = vmul.f32 %v3138_v24, %v3252_v35  ;;  %2789 = vmatprep.subr.msk.bf16.mxu0 %vm551_vm0, %v3257_v39  ;;  %2785 = vmatprep.subr.msk.bf16.mxu1 %vm551_vm0, %v3262_v40  ;;  %v3293_v62 = vpack.c.bf16 %v393_v51, %v393_v51  ;;  %v396_v1 = vmul.f32 %v3138_v24, %v3273_v49 }
  0xbc   : > { %v489_v44 = vshrl.u32 %v3278_v54, 16  ;;  %v491_v63 = vshll.u32 %v3278_v54, 16  ;;  %v3303_v3 = vsel %vm427_vm4, %v470_v56, %v474_v50  ;;  %v486_v7 = vrot.slane %v484_v60, 1  ;;  %3845 = vst [vmem:[#allocation8_spill] sm:$0xff] %v3330_v43 }
  0xbd   : > { %v482_v6 = vor.u32 %v481_v57, %v477_v46  ;;  %v3305_v8 = vpack.c.bf16 %v395_v30, %v394_v55  ;;  %2551 = vmatprep.mubr.msk.bf16.mxu0 %vm526_vm5, %v3303_v3  ;;  %v496_v13 = vshll.u32 %v3293_v62, 16  ;;  %v3313_v15 = vpack.c.bf16 %v396_v1, %v396_v1 }
  0xbe   : > { %v493_v12 = vrot.slane %v491_v63, 1  ;;  %v397_v16 = vmul.f32 %v3138_v24, %v3287_v61  ;;  %v398_v34 = vmul.f32 %v3138_v24, %v3300_v2  ;;  %v399_v51 = vmul.f32 %v3138_v24, %v3308_v9 }
  0xbf   : > { %v3324_v32 = vsel %vm427_vm4, %v482_v6, %v486_v7  ;;  %v503_v33 = vshll.u32 %v3305_v8, 16  ;;  %v498_v48 = vrot.slane %v496_v13, 1  ;;  %v501_v50 = vshrl.u32 %v3305_v8, 16 }
  0xc0   : > { %2480 = vmatmul.mubr.msk.bf16.gmra.mrb[4].mxu1 %vm526_vm5, %v3303_v3  ;;  %v494_v46 = vor.u32 %v493_v12, %v489_v44  ;;  %v3341_v56 = vpack.c.bf16 %v398_v34, %v397_v16  ;;  %v400_v57 = vmul.f32 %v3138_v24, %v3318_v17  ;;  %v401_v60 = vmul.f32 %v3138_v24, %v3321_v18 }
  0xc1   : > { %2552 = vmatmul.mubr.msk.bf16.gmra.mrb[4].mxu0 %vm526_vm5, %v3324_v32  ;;  %2483 = vmatprep.mubr.msk.bf16.mxu1 %vm526_vm5, %v3324_v32  ;;  %v505_v55 = vrot.slane %v503_v33, 1  ;;  %v508_v44 = vshll.u32 %v3313_v15, 16  ;;  %v3351_v63 = vpack.c.bf16 %v399_v51, %v399_v51  ;;  %v402_v1 = vmul.f32 %v3138_v24, %v3330_v43 }
  0xc2   : > { %v3348_v30 = vsel %vm427_vm4, %v494_v46, %v498_v48  ;;  %v515_v6 = vshll.u32 %v3341_v56, 16  ;;  %v3358_v7 = vpack.c.bf16 %v401_v60, %v400_v57  ;;  %v513_v16 = vshrl.u32 %v3341_v56, 16 }
  0xc3   : > { %2555 = vmatprep.mubr.msk.bf16.mxu0 %vm526_vm5, %v3348_v30  ;;  %v506_v12 = vor.u32 %v505_v55, %v501_v50  ;;  %v520_v13 = vshll.u32 %v3351_v63, 16  ;;  %v510_v46 = vrot.slane %v508_v44, 1  ;;  %v3363_v48 = vpack.c.bf16 %v402_v1, %v402_v1  ;;  %v368_v1 = vld [vmem:[%s3118_s14 + $0xd8] sm:$0xff] }
  0xc4   : > { %v517_v33 = vrot.slane %v515_v6, 1  ;;  %v1074_v34 = vshll.u32 %v3358_v7, 16  ;;  %v1072_v60 = vshrl.u32 %v3358_v7, 16  ;;  %v369_v6 = vld [vmem:[%s3118_s14 + $0xe0] sm:$0xff]  ;;  %v1336_v61 = vsel %vm551_vm0, %v3257_v39, 0 }
  0xc5   : > { %v522_v9 = vrot.slane %v520_v13, 1  ;;  %v3368_v50 = vsel %vm427_vm4, %v506_v12, %v510_v46  ;;  %v1079_v44 = vshll.u32 %v3363_v48, 16  ;;  %v370_v12 = vld [vmem:[%s3118_s14 + $0xe8] sm:$0x3] }
  0xc6   : > { %v518_v51 = vor.u32 %v517_v33, %v513_v16  ;;  %v1076_v55 = vrot.slane %v1074_v34, 1  ;;  %v788_v16 = vrot.slane %v3174_v41, 1  ;;  %v789_v33 = vrot.slane %v3176_v42, 1 }
  0xc7   : > { %v403_v34 = vmul.f32 %v3138_v24, %v368_v1  ;;  %v1081_v46 = vrot.slane %v1079_v44, 1 }
  0xc8   : > { %2484 = vmatmul.mubr.msk.bf16.gmra.mrb[8].mxu1 %vm526_vm5, %v3348_v30  ;;  %v3375_v57 = vsel %vm427_vm4, %v518_v51, %v522_v9  ;;  %v1077_v13 = vor.u32 %v1076_v55, %v1072_v60  ;;  %v404_v9 = vmul.f32 %v3138_v24, %v369_v6  ;;  %v405_v51 = vmul.f32 %v3138_v24, %v370_v12 }
  0xc9   : > { %2556 = vmatmul.mubr.msk.bf16.gmra.mrb[8].mxu0 %vm526_vm5, %v3368_v50  ;;  %2487 = vmatprep.mubr.msk.bf16.mxu1 %vm526_vm5, %v3368_v50  ;;  %v790_v42 = vsel %vm784_vm6, %v788_v16, %v789_v33  ;;  %v794_v16 = vrot.slane %v3209_v4, 1  ;;  %v795_v33 = vrot.slane %v3225_v14, 1  ;;  %v2334_v14 = vld [vmem:[%s3832_s3 + $0x1c] sm:$0xf] }
  0xca   : > { %2559 = vmatprep.mubr.msk.bf16.mxu0 %vm526_vm5, %v3375_v57  ;;  %v3389_v43 = vpack.c.bf16 %v404_v9, %v403_v34  ;;  %v3394_v2 = vsel %vm427_vm4, %v1077_v13, %v1081_v46  ;;  %v425_v55 = vpack.c.bf16 %v405_v51, %v405_v51  ;;  %v792_v13 = vrot.slane %v3192_v52, 1 }
  0xcb   : > { %v791_v34 = vrot.slane %v3185_v47, 1  ;;  %v3432_v39 = vsel %vm784_vm6, %v794_v16, %v795_v33 }
  0xcc   : > { %v1453_v60 = vshll.u32 %v3389_v43, 16  ;;  %v1585_v24 = vrot.slane %v3389_v43, 1  ;;  %v1458_v44 = vshll.u32 %v425_v55, 16  ;;  %v1586_v1 = vrot.slane %v425_v55, 1 }
  0xcd   : > { %v1451_v6 = vshrl.u32 %v3389_v43, 16  ;;  %v3420_v52 = vsel %vm784_vm6, %v791_v34, %v792_v13  ;;  %v806_v13 = vrot.slane %v3341_v56, 1  ;;  %v807_v34 = vrot.slane %v3351_v63, 1 }
  0xce   : > { %v1455_v12 = vrot.slane %v1453_v60, 1  ;;  %v3408_v9 = vsel %vm784_vm6, %v1585_v24, %v1586_v1  ;;  %v1460_v51 = vrot.slane %v1458_v44, 1  ;;  %v836_v60 = vsel %vm551_vm0, %v3262_v40, 0  ;;  %v2298_v24 = vld [vmem:[%s3832_s3 + $0xc] sm:$0xf] }
  0xcf   : > { %v797_v40 = vrot.slane %v3233_v20, 1  ;;  %v798_v44 = vrot.slane %v3268_v45, 1  ;;  %v800_v1 = vrot.slane %v3278_v54, 1  ;;  %v808_v33 = vsel %vm784_vm6, %v806_v13, %v807_v34 }
  0xd0   : > { %2488 = vmatmul.mubr.msk.bf16.gmra.mrb[12].mxu1 %vm526_vm5, %v3375_v57  ;;  %v1456_v46 = vor.u32 %v1455_v12, %v1451_v6  ;;  %v801_v6 = vrot.slane %v3293_v62, 1  ;;  %v803_v62 = vrot.slane %v3305_v8, 1  ;;  %v804_v12 = vrot.slane %v3313_v15, 1 }
  0xd1   : > { %2560 = vmatmul.mubr.msk.bf16.gmra.mrb[12].mxu0 %vm526_vm5, %v3394_v2  ;;  %2493 = vmatprep.mubr.msk.bf16.mxu1 %vm526_vm5, %v3166_v37  ;;  %v1206_v15 = vrot.slane %v3358_v7, 1  ;;  %v785_v63 = vrot.slane %v3166_v37, 1  ;;  %v957_v37 = vsel %vm551_vm0, %v2298_v24, 0 }
  0xd2   : > { %2565 = vmatprep.mubr.msk.bf16.mxu0 %vm526_vm5, %v790_v42  ;;  %v3415_v55 = vsel %vm427_vm4, %v1456_v46, %v1460_v51  ;;  %v3455_v45 = vsel %vm784_vm6, %v800_v1, %v801_v6  ;;  %v805_v16 = vsel %vm784_vm6, %v803_v62, %v804_v12  ;;  %v1207_v46 = vrot.slane %v3363_v48, 1 }
  0xd3   : > { %v786_v51 = vrot.slane %v3168_v38, 1  ;;  %v1468_v48 = vsel %vm551_vm0, %v2334_v14, 0  ;;  %v2343_v38 = vld [vmem:[%s3832_s3 + $0x20] sm:$0xf] }
  0xd8   : > { %2494 = vmatmul.mubr.msk.bf16.vlgmr.msra.gmra.mrb[0].mxu1 %vm526_vm5, %v3174_v41 }
  0xd9   : > { %2566 = vmatmul.mubr.msk.bf16.vlgmr.msra.gmra.mrb[0].mxu0 %vm526_vm5, %v3420_v52  ;;  %2497 = vmatprep.mubr.msk.bf16.mxu1 %vm526_vm5, %v3185_v47 }
  0xda   : > { %2582 = vmatpush3.bf16.msra.mxu0 %v1336_v61  ;;  %2569 = vmatprep.mubr.msk.bf16.mxu0 %vm526_vm5, %v3432_v39  ;;  %v3448_v61 = vsel %vm784_vm6, %v797_v40, %v798_v44  ;;  %v787_v40 = vsel %vm784_vm6, %v785_v63, %v786_v51 }
  0xdb   : > { %2510 = vmatpush3.bf16.msra.mxu1 %v836_v60  ;;  %2790 = vmatprep.subr.msk.bf16.mxu0 %vm551_vm0, %v2334_v14  ;;  %v1208_v60 = vsel %vm784_vm6, %v1206_v15, %v1207_v46  ;;  %v3581_v14 = vld [vmem:[%s306_s17] ss:$0 sm:$0xff] }
  0xdc   : > { %2786 = vmatprep.subr.msk.bf16.mxu1 %vm551_vm0, %v2298_v24 }
  0xe0   : > { %2498 = vmatmul.mubr.msk.bf16.gmra.mrb[4].mxu1 %vm526_vm5, %v3209_v4 }
  0xe1   : > { %2570 = vmatmul.mubr.msk.bf16.gmra.mrb[4].mxu0 %vm526_vm5, %v3448_v61  ;;  %2501 = vmatprep.mubr.msk.bf16.mxu1 %vm526_vm5, %v3233_v20 }
  0xe2   : > { %2573 = vmatprep.mubr.msk.bf16.mxu0 %vm526_vm5, %v3455_v45 }
  0xe8   : > { %2502 = vmatmul.mubr.msk.bf16.gmra.mrb[8].mxu1 %vm526_vm5, %v3278_v54 }
  0xe9   : > { %2574 = vmatmul.mubr.msk.bf16.gmra.mrb[8].mxu0 %vm526_vm5, %v805_v16  ;;  %2505 = vmatprep.mubr.msk.bf16.mxu1 %vm526_vm5, %v3305_v8 }
  0xea   : > { %2577 = vmatprep.mubr.msk.bf16.mxu0 %vm526_vm5, %v808_v33 }
  0xf0   : > { %2506 = vmatmul.mubr.msk.bf16.gmra.mrb[12].mxu1 %vm526_vm5, %v3341_v56 }
  0xf1   : > { %2578 = vmatmul.mubr.msk.bf16.gmra.mrb[12].mxu0 %vm526_vm5, %v1208_v60  ;;  %2511 = vmatprep.mubr.msk.bf16.mxu1 %vm526_vm5, %v787_v40 }
  0xf2   : > { %2583 = vmatprep.mubr.msk.bf16.mxu0 %vm526_vm5, %v3185_v47 }
  0xf8   : > { %2512 = vmatmul.mubr.msk.bf16.vlgmr.msra.gmra.mrb[0].mxu1 %vm526_vm5, %v790_v42  ;;  %v1594_v42 = vsel %vm551_vm0, %v2343_v38, 0 }
  0xf9   : > { %2584 = vmatmul.mubr.msk.bf16.vlgmr.msra.gmra.mrb[0].mxu0 %vm526_vm5, %v3209_v4  ;;  %2515 = vmatprep.mubr.msk.bf16.mxu1 %vm526_vm5, %v3420_v52 }
  0xfa   : > { %2600 = vmatpush3.bf16.msra.mxu0 %v1468_v48  ;;  %2587 = vmatprep.mubr.msk.bf16.mxu0 %vm526_vm5, %v3233_v20 }
  0xfb   : > { %2528 = vmatpush3.bf16.msra.mxu1 %v957_v37  ;;  %2791 = vmatprep.subr.msk.bf16.mxu0 %vm551_vm0, %v2343_v38 }
 0x100   : > { %2516 = vmatmul.mubr.msk.bf16.gmra.mrb[4].mxu1 %vm526_vm5, %v3432_v39 }
 0x101   : > { %2588 = vmatmul.mubr.msk.bf16.gmra.mrb[4].mxu0 %vm526_vm5, %v3278_v54  ;;  %2519 = vmatprep.mubr.msk.bf16.mxu1 %vm526_vm5, %v3448_v61 }
 0x102   : > { %2591 = vmatprep.mubr.msk.bf16.mxu0 %vm526_vm5, %v3305_v8 }
 0x108   : > { %2520 = vmatmul.mubr.msk.bf16.gmra.mrb[8].mxu1 %vm526_vm5, %v3455_v45 }
 0x109   : > { %2592 = vmatmul.mubr.msk.bf16.gmra.mrb[8].mxu0 %vm526_vm5, %v3341_v56  ;;  %2523 = vmatprep.mubr.msk.bf16.mxu1 %vm526_vm5, %v805_v16 }
 0x10a   : > { %2595 = vmatprep.mubr.msk.bf16.mxu0 %vm526_vm5, %v3358_v7 }
 0x110   : > { %2524 = vmatmul.mubr.msk.bf16.gmra.mrb[12].mxu1 %vm526_vm5, %v808_v33 }
 0x111   : > { %2596 = vmatmul.mubr.msk.bf16.gmra.mrb[12].mxu0 %vm526_vm5, %v3389_v43  ;;  %2529 = vmatprep.mubr.msk.bf16.mxu1 %vm526_vm5, %v3174_v41  ;;  %v2851_v41 = vld [vmem:[%s3833_s4] sm:$0xff]  }
 0x112   : > { %2601 = vmatprep.mubr.msk.bf16.mxu0 %vm526_vm5, %v3244_v29  ;;  %2635 = vmatprep.subr.bf16.mxu1 %v2851_v41 }
 0x118   : > { %2530 = vmatmul.mubr.msk.bf16.vlgmr.msra.gmra.mrb[0].mxu1 %vm526_vm5, %v3185_v47  ;;  %v2852_v47 = vld [vmem:[%s3833_s4 + $0x8] sm:$0xff]  }
 0x119   : > { %2602 = vmatmul.mubr.msk.bf16.vlgmr.msra.gmra.mrb[0].mxu0 %vm526_vm5, %v3303_v3  ;;  %2533 = vmatprep.mubr.msk.bf16.mxu1 %vm526_vm5, %v3209_v4  ;;  %v2858_v4 = vpop.eup %2857 }
 0x11a   : > { %2618 = vmatpush3.bf16.msra.mxu0 %v1594_v42  ;;  %2605 = vmatprep.mubr.msk.bf16.mxu0 %vm526_vm5, %v3324_v32  ;;  %2798 = vpush %v2858_v4 }
 0x11b   : > { %2636 = vmatpush3.bf16.msra.mxu1 %v2851_v41 }
 0x11c   : > { %2637 = vmatprep.subr.bf16.mxu1 %v2852_v47 }
 0x11f   : > { %2638 = vmatpush3.bf16.msra.mxu1 %v2852_v47 }
 0x120   : > { %2534 = vmatmul.mubr.msk.bf16.gmra.mrb[4].mxu1 %vm526_vm5, %v3233_v20 }
 0x121   : > { %2606 = vmatmul.mubr.msk.bf16.gmra.mrb[4].mxu0 %vm526_vm5, %v3348_v30  ;;  %2537 = vmatprep.mubr.msk.bf16.mxu1 %vm526_vm5, %v3278_v54 }
 0x122   : > { %2609 = vmatprep.mubr.msk.bf16.mxu0 %vm526_vm5, %v3368_v50 }
 0x128   : > { %2538 = vmatmul.mubr.msk.bf16.gmra.mrb[8].mxu1 %vm526_vm5, %v3305_v8 }
 0x129   : > { %2610 = vmatmul.mubr.msk.bf16.gmra.mrb[8].mxu0 %vm526_vm5, %v3375_v57  ;;  %2541 = vmatprep.mubr.msk.bf16.mxu1 %vm526_vm5, %v3341_v56 }
 0x12a   : > { %2613 = vmatprep.mubr.msk.bf16.mxu0 %vm526_vm5, %v3394_v2 }
 0x130   : > { %2542 = vmatmul.mubr.msk.bf16.gmra.mrb[12].mxu1 %vm526_vm5, %v3358_v7 }
 0x131   : > { %2614 = vmatmul.mubr.msk.bf16.gmra.mrb[12].mxu0 %vm526_vm5, %v3415_v55 }
 0x132   : > { %2619 = vmatprep.mubr.msk.bf16.mxu0 %vm526_vm5, %v3420_v52 }
 0x139   : > { %2620 = vmatmul.mubr.msk.bf16.vlgmr.msra.gmra.mrb[0].mxu0 %vm526_vm5, %v3432_v39 }
 0x13a   : > { %2623 = vmatprep.mubr.msk.bf16.mxu0 %vm526_vm5, %v3448_v61 }
 0x141   : > { %2624 = vmatmul.mubr.msk.bf16.gmra.mrb[4].mxu0 %vm526_vm5, %v3455_v45 }
 0x142   : > { %2627 = vmatprep.mubr.msk.bf16.mxu0 %vm526_vm5, %v805_v16 }
 0x149   : > { %2628 = vmatmul.mubr.msk.bf16.gmra.mrb[8].mxu0 %vm526_vm5, %v808_v33 }
 0x14a   : > { %2631 = vmatprep.mubr.msk.bf16.mxu0 %vm526_vm5, %v1208_v60 }
 0x14b   : > { %s2799_s18 = spop %2798 }
 0x14c   : > { %s335_s20 = smul.f32 0.25, %s2799_s18 }
 0x151   : > { %2632 = vmatmul.mubr.msk.bf16.gmra.mrb[12].mxu0 %vm526_vm5, %v3408_v9 }
 0x1eb   : > { %v2531_v20 = vpop.f32.mrb[0].mxu1 }
 0x1ec   : > { %v993_v29 = vpop.f32.mrb[1].mxu1 }
 0x1ed   : > { %v2532_v54 = vpop.f32.mrb[2].mxu1 }
 0x1ee   : > { %v996_v2 = vpop.f32.mrb[3].mxu1 }
 0x1f3   : > { %v2535_v3 = vpop.f32.mrb[4].mxu1 }
 0x1f4   : > { %v1009_v8 = vpop.f32.mrb[5].mxu1 }
 0x1f5   : > { %v2536_v32 = vpop.f32.mrb[6].mxu1 }
 0x1f6   : > { %v1012_v43 = vpop.f32.mrb[7].mxu1 }
 0x1fb   : > { %v2539_v56 = vpop.f32.mrb[8].mxu1 }
 0x1fc   : > { %v1025_v30 = vpop.f32.mrb[9].mxu1 }
 0x1fd   : > { %v2540_v7 = vpop.f32.mrb[10].mxu1 }
 0x1fe   : > { %v3567_v50 = vpop.f32.mrb[11].mxu1 }
 0x203   : > { %v3569_v57 = vpop.f32.mrb[12].mxu1 }
 0x204   : > { %v3571_v9 = vpop.f32.mrb[13].mxu1 }
 0x205   : > { %v3573_v0 = vpop.f32.mrb[14].mxu1 }
 0x206   : > { %v3575_v55 = vpop.f32.mrb[15].mxu1 }
 0x20c   : > { %v2621_v52 = vpop.f32.mrb[0].mxu0 }
 0x20d   : > { %v2655_v39 = vadd.f32 %v2621_v52, %v2531_v20  ;;  %v1630_v24 = vpop.f32.mrb[1].mxu0 }
 0x20e   : > { %v2656_v44 = vadd.f32 %v1630_v24, %v993_v29  ;;  %v2622_v1 = vpop.f32.mrb[2].mxu0 }
 0x20f   : > { %v3584_v6 = vadd.f32 %v2655_v39, %v3581_v14  ;;  %v2657_v61 = vadd.f32 %v2622_v1, %v2532_v54  ;;  %v1633_v45 = vpop.f32.mrb[3].mxu0 }
 0x210   : > { %v3587_v62 = vadd.f32 %v2656_v44, %v3581_v14  ;;  %v2658_v12 = vadd.f32 %v1633_v45, %v996_v2 }
 0x211   : > { %v2355_v13 = vmul.f32 -1.442695, %v3584_v6  ;;  %v3591_v34 = vadd.f32 %v2657_v61, %v3581_v14 }
 0x212   : > { %v2353_v16 = vmul.f32 -1.442695, %v3587_v62  ;;  %v3595_v33 = vadd.f32 %v2658_v12, %v3581_v14 }
 0x213   : > { %2859 = vpow2.f32 %v2355_v13  ;;  %v2356_v15 = vmul.f32 -1.442695, %v3591_v34 }
 0x214   : > { %2861 = vpow2.f32 %v2353_v16  ;;  %v2354_v46 = vmul.f32 -1.442695, %v3595_v33  ;;  %v2625_v63 = vpop.f32.mrb[4].mxu0 }
 0x215   : > { %2863 = vpow2.f32 %v2356_v15  ;;  %v2659_v51 = vadd.f32 %v2625_v63, %v2535_v3  ;;  %v1646_v60 = vpop.f32.mrb[5].mxu0 }
 0x216   : > { %2865 = vpow2.f32 %v2354_v46  ;;  %v2660_v40 = vadd.f32 %v1646_v60, %v1009_v8  ;;  %v2626_v48 = vpop.f32.mrb[6].mxu0 }
 0x217   : > { %v3600_v37 = vadd.f32 %v2659_v51, %v3581_v14  ;;  %v2661_v38 = vadd.f32 %v2626_v48, %v2536_v32  ;;  %v1649_v42 = vpop.f32.mrb[7].mxu0 }
 0x218   : > { %v3603_v41 = vadd.f32 %v2660_v40, %v3581_v14  ;;  %v2662_v47 = vadd.f32 %v1649_v42, %v1012_v43 }
 0x219   : > { %v2359_v4 = vmul.f32 -1.442695, %v3600_v37  ;;  %v3607_v20 = vadd.f32 %v2661_v38, %v3581_v14 }
 0x21a   : > { %v2357_v29 = vmul.f32 -1.442695, %v3603_v41  ;;  %v3611_v54 = vadd.f32 %v2662_v47, %v3581_v14 }
 0x21b   : > { %2867 = vpow2.f32 %v2359_v4  ;;  %v2360_v2 = vmul.f32 -1.442695, %v3607_v20 }
 0x21c   : > { %2869 = vpow2.f32 %v2357_v29  ;;  %v2358_v3 = vmul.f32 -1.442695, %v3611_v54  ;;  %v2629_v8 = vpop.f32.mrb[8].mxu0 }
 0x21d   : > { %v2860_v32 = vpop.eup %2859  ;;  %2871 = vpow2.f32 %v2360_v2  ;;  %v2663_v43 = vadd.f32 %v2629_v8, %v2539_v56  ;;  %v1662_v52 = vpop.f32.mrb[9].mxu0 }
 0x21e   : > { %v2862_v39 = vpop.eup %2861  ;;  %v1782_v24 = vadd.f32 1.0, %v2860_v32  ;;  %2873 = vpow2.f32 %v2358_v3  ;;  %v2664_v44 = vadd.f32 %v1662_v52, %v1025_v30  ;;  %v2630_v1 = vpop.f32.mrb[10].mxu0 }
 0x21f   : > { %v2864_v61 = vpop.eup %2863  ;;  %v1780_v45 = vadd.f32 1.0, %v2862_v39  ;;  %v3616_v12 = vadd.f32 %v2663_v43, %v3581_v14  ;;  %v2665_v13 = vadd.f32 %v2630_v1, %v2540_v7  ;;  %v1665_v16 = vpop.f32.mrb[11].mxu0 }
 0x220   : > { %v2866_v15 = vpop.eup %2865  ;;  %2875 = vrcp.f32 %v1782_v24  ;;  %v1783_v46 = vadd.f32 1.0, %v2864_v61  ;;  %v3619_v63 = vadd.f32 %v2664_v44, %v3581_v14  ;;  %v2666_v56 = vadd.f32 %v1665_v16, %v3567_v50 }
 0x221   : > { %2877 = vrcp.f32 %v1780_v45  ;;  %v1781_v51 = vadd.f32 1.0, %v2866_v15  ;;  %v2363_v30 = vmul.f32 -1.442695, %v3616_v12  ;;  %v3624_v60 = vadd.f32 %v2665_v13, %v3581_v14 }
 0x222   : > { %2879 = vrcp.f32 %v1783_v46  ;;  %v2361_v40 = vmul.f32 -1.442695, %v3619_v63  ;;  %v3628_v7 = vadd.f32 %v2666_v56, %v3581_v14 }
 0x223   : > { %2881 = vrcp.f32 %v1781_v51  ;;  %v2364_v48 = vmul.f32 -1.442695, %v3624_v60 }
 0x224   : > { %2883 = vpow2.f32 %v2363_v30  ;;  %v2362_v38 = vmul.f32 -1.442695, %v3628_v7  ;;  %v2633_v50 = vpop.f32.mrb[12].mxu0 }
 0x225   : > { %v2868_v42 = vpop.eup %2867  ;;  %2885 = vpow2.f32 %v2361_v40  ;;  %v2667_v47 = vadd.f32 %v2633_v50, %v3569_v57  ;;  %v1678_v4 = vpop.f32.mrb[13].mxu0 }
 0x226   : > { %v2870_v29 = vpop.eup %2869  ;;  %v1786_v2 = vadd.f32 1.0, %v2868_v42  ;;  %2887 = vpow2.f32 %v2364_v48  ;;  %v2668_v3 = vadd.f32 %v1678_v4, %v3571_v9  ;;  %v2634_v8 = vpop.f32.mrb[14].mxu0 }
 0x227   : > { %v2872_v32 = vpop.eup %2871  ;;  %v1784_v43 = vadd.f32 1.0, %v2870_v29  ;;  %2889 = vpow2.f32 %v2362_v38  ;;  %v3635_v52 = vadd.f32 %v2667_v47, %v3581_v14  ;;  %v2669_v39 = vadd.f32 %v2634_v8, %v3573_v0  ;;  %v1681_v24 = vpop.f32.mrb[15].mxu0 }
 0x228   : > { %v2874_v44 = vpop.eup %2873  ;;  %2891 = vrcp.f32 %v1786_v2  ;;  %v1787_v1 = vadd.f32 1.0, %v2872_v32  ;;  %v3639_v57 = vadd.f32 %v2668_v3, %v3581_v14  ;;  %v2670_v61 = vadd.f32 %v1681_v24, %v3575_v55 }
 0x229   : > { %2893 = vrcp.f32 %v1784_v43  ;;  %v1785_v9 = vadd.f32 1.0, %v2874_v44  ;;  %v2367_v45 = vmul.f32 -1.442695, %v3635_v52  ;;  %v3644_v13 = vadd.f32 %v2669_v39, %v3581_v14 }
 0x22a   : > { %v2876_v16 = vpop.eup %2875  ;;  %2895 = vrcp.f32 %v1787_v1  ;;  %v2365_v0 = vmul.f32 -1.442695, %v3639_v57  ;;  %v3648_v15 = vadd.f32 %v2670_v61, %v3581_v14 }
 0x22b   : > { %v2878_v46 = vpop.eup %2877  ;;  %2897 = vrcp.f32 %v1785_v9  ;;  %v2368_v56 = vmul.f32 -1.442695, %v3644_v13  ;;  %v1830_v40 = vmul.f32 %v2876_v16, %v3584_v6 }
 0x22c   : > { %v2880_v51 = vpop.eup %2879  ;;  %2899 = vpow2.f32 %v2367_v45  ;;  %v2366_v55 = vmul.f32 -1.442695, %v3648_v15  ;;  %v1828_v50 = vmul.f32 %v2878_v46, %v3587_v62 }
 0x22d   : > { %v2882_v30 = vpop.eup %2881  ;;  %v1831_v48 = vmul.f32 %v2880_v51, %v3591_v34  ;;  %2901 = vpow2.f32 %v2365_v0 }
 0x22e   : > { %v2884_v38 = vpop.eup %2883  ;;  %v1829_v14 = vmul.f32 %v2882_v30, %v3595_v33  ;;  %2903 = vpow2.f32 %v2368_v56 }
 0x22f   : > { %v2886_v42 = vpop.eup %2885  ;;  %v1845_v47 = vpack.c.bf16 %v1831_v48, %v1830_v40  ;;  %v1790_v4 = vadd.f32 1.0, %v2884_v38  ;;  %2905 = vpow2.f32 %v2366_v55 }
 0x230   : > { %v2888_v29 = vpop.eup %2887  ;;  %v1844_v2 = vpack.c.bf16 %v1829_v14, %v1828_v50  ;;  %v1788_v3 = vadd.f32 1.0, %v2886_v42 }
 0x231   : > { %v2890_v8 = vpop.eup %2889  ;;  %2907 = vrcp.f32 %v1790_v4  ;;  %v1791_v6 = vadd.f32 1.0, %v2888_v29 }
 0x232   : > { %v2892_v32 = vpop.eup %2891  ;;  %2909 = vrcp.f32 %v1788_v3  ;;  %v1789_v34 = vadd.f32 1.0, %v2890_v8  ;;  %2639 = vmatprep.mubr.msk.bf16.mxu1 %vm1875_vm7, %v1844_v2 }
 0x233   : > { %v2894_v62 = vpop.eup %2893  ;;  %2911 = vrcp.f32 %v1791_v6  ;;  %2640 = vmatmul.mubr.msk.bf16.vlgmr.msra.gmra.mrb[16].mxu1 %vm1875_vm7, %v1845_v47  ;;  %v1834_v39 = vmul.f32 %v2892_v32, %v3600_v37  ;;  %v2027_v6 = vrot.slane %v3136_v23, 1  ;;  %v2023_v32 = vrot.slane %v3130_v21, 1  ;;  %v3692_v23 = vld [vmem:[%s3834_s5] ss:$0 sm:$0xff] }
 0x234   : > { %v2896_v33 = vpop.eup %2895  ;;  %2913 = vrcp.f32 %v1789_v34  ;;  %v1832_v1 = vmul.f32 %v2894_v62, %v3603_v41  ;;  %v3686_v34 = vstv %s335_s20  ;;  %v3695_v21 = vstv %s340_s30 }
 0x235   : > { %v2898_v43 = vpop.eup %2897  ;;  %v1835_v24 = vmul.f32 %v2896_v33, %v3607_v20 }
 0x236   : > { %v2900_v44 = vpop.eup %2899  ;;  %v1833_v61 = vmul.f32 %v2898_v43, %v3611_v54 }
 0x237   : > { %v2902_v9 = vpop.eup %2901  ;;  %v1847_v45 = vpack.c.bf16 %v1835_v24, %v1834_v39  ;;  %v1794_v16 = vadd.f32 1.0, %v2900_v44  ;;  %v2037_v44 = vrot.slane %v3200_v58, 1 }
 0x238   : > { %v2904_v0 = vpop.eup %2903  ;;  %v1846_v46 = vpack.c.bf16 %v1833_v61, %v1832_v1  ;;  %v1792_v56 = vadd.f32 1.0, %v2902_v9  ;;  %v2038_v9 = vrot.slane %v3203_v59, 1 }
 0x239   : > { %v2906_v51 = vpop.eup %2905  ;;  %2915 = vrcp.f32 %v1794_v16  ;;  %v1795_v55 = vadd.f32 1.0, %v2904_v0  ;;  %v2033_v16 = vrot.slane %v3164_v36, 1 }
 0x23a   : > { %2917 = vrcp.f32 %v1792_v56  ;;  %v1793_v30 = vadd.f32 1.0, %v2906_v51  ;;  %2643 = vmatprep.mubr.msk.bf16.mxu1 %vm1875_vm7, %v1846_v46 }
 0x23b   : > { %v2908_v37 = vpop.eup %2907  ;;  %2919 = vrcp.f32 %v1795_v55  ;;  %2644 = vmatmul.mubr.msk.bf16.gmra.mrb[20].mxu1 %vm1875_vm7, %v1847_v45  ;;  %v2032_v45 = vrot.slane %v3153_v31, 1  ;;  %v2040_v55 = vrot.slane %v3212_v5, 1 }
 0x23c   : > { %v2910_v41 = vpop.eup %2909  ;;  %2921 = vrcp.f32 %v1793_v30  ;;  %v1838_v40 = vmul.f32 %v2908_v37, %v3616_v12  ;;  %v2035_v37 = vrot.slane %v3195_v53, 1 }
 0x23d   : > { %v2912_v20 = vpop.eup %2911  ;;  %v1836_v38 = vmul.f32 %v2910_v41, %v3619_v63 }
 0x23e   : > { %v2914_v54 = vpop.eup %2913  ;;  %v1839_v48 = vmul.f32 %v2912_v20, %v3624_v60  ;;  %v2039_v20 = vsel %vm784_vm6, %v2037_v44, %v2038_v9 }
 0x23f   : > { %v1837_v50 = vmul.f32 %v2914_v54, %v3628_v7  ;;  %v2034_v54 = vsel %vm784_vm6, %v2032_v45, %v2033_v16  ;;  %v2057_v45 = vrot.slane %v3318_v17, 1 }
 0x240   : > { %v1849_v14 = vpack.c.bf16 %v1839_v48, %v1838_v40  ;;  %v2041_v48 = vsel %vm784_vm6, %v2038_v9, %v2040_v55 }
 0x241   : > { %v1848_v42 = vpack.c.bf16 %v1837_v50, %v1836_v38 }
 0x243   : > { %v2916_v47 = vpop.eup %2915  ;;  %2647 = vmatprep.mubr.msk.bf16.mxu1 %vm1875_vm7, %v1848_v42 }
 0x244   : > { %v2918_v4 = vpop.eup %2917  ;;  %2648 = vmatmul.mubr.msk.bf16.gmra.mrb[24].mxu1 %vm1875_vm7, %v1849_v14  ;;  %v1842_v12 = vmul.f32 %v2916_v47, %v3635_v52  ;;  %v2028_v52 = vrot.slane %v3141_v25, 1  ;;  %v2085_v14 = vmul.f32 %v3686_v34, %v2039_v20  ;;  %v2083_v47 = vmul.f32 %v3686_v34, %v2034_v54 }
 0x245   : > { %v2920_v29 = vpop.eup %2919  ;;  %v1840_v63 = vmul.f32 %v2918_v4, %v3639_v57  ;;  %v2030_v57 = vrot.slane %v3144_v26, 1  ;;  %v2036_v4 = vsel %vm784_vm6, %v2033_v16, %v2035_v37  ;;  %v2058_v16 = vrot.slane %v3321_v18, 1 }
 0x246   : > { %v2922_v2 = vpop.eup %2921  ;;  %v1843_v60 = vmul.f32 %v2920_v29, %v3644_v13  ;;  %v2022_v13 = vrot.slane %v3126_v19, 1  ;;  %v2029_v62 = vsel %vm784_vm6, %v2027_v6, %v2028_v52  ;;  %v2042_v6 = vrot.slane %v3219_v10, 1 }
 0x247   : > { %v1841_v7 = vmul.f32 %v2922_v2, %v3648_v15  ;;  %v2025_v15 = vrot.slane %v3133_v22, 1  ;;  %v2081_v33 = vmul.f32 %v3686_v34, %v2029_v62  ;;  %v2031_v26 = vsel %vm784_vm6, %v2028_v52, %v2030_v57 }
 0x248   : > { %v1851_v3 = vpack.c.bf16 %v1843_v60, %v1842_v12  ;;  %v2024_v19 = vsel %vm784_vm6, %v2022_v13, %v2023_v32  ;;  %v2082_v56 = vmul.f32 %v3686_v34, %v2031_v26  ;;  %v2086_v12 = vmul.f32 %v3686_v34, %v2041_v48 }
 0x249   : > { %v1850_v8 = vpack.c.bf16 %v1841_v7, %v1840_v63  ;;  %v2079_v39 = vmul.f32 %v3686_v34, %v2024_v19  ;;  %v2026_v24 = vsel %vm784_vm6, %v2023_v32, %v2025_v15  ;;  %v2047_v60 = vrot.slane %v3239_v28, 1 }
 0x24a   : > { %v2080_v58 = vmul.f32 %v3686_v34, %v2026_v24  ;;  %v2048_v63 = vrot.slane %v3252_v35, 1  ;;  %v2043_v52 = vrot.slane %v3222_v11, 1  ;;  %v2084_v28 = vmul.f32 %v3686_v34, %v2036_v4 }
 0x24b   : > { %2651 = vmatprep.mubr.msk.bf16.mxu1 %vm1875_vm7, %v1850_v8  ;;  %v2050_v35 = vrot.slane %v3273_v49, 1  ;;  %v2045_v10 = vrot.slane %v3236_v27, 1  ;;  %v2059_v48 = vsel %vm784_vm6, %v2057_v45, %v2058_v16 }
 0x24c   : > { %2652 = vmatmul.mubr.msk.bf16.gmra.mrb[28].mxu1 %vm1875_vm7, %v1851_v3  ;;  %v2093_v4 = vmul.f32 %v3686_v34, %v2059_v48 }
 0x24d   : > { %v2051_v49 = vsel %vm784_vm6, %v2048_v63, %v2050_v35  ;;  %v2046_v44 = vsel %vm784_vm6, %v2043_v52, %v2045_v10 }
 0x24e   : > { %v2090_v9 = vmul.f32 %v3686_v34, %v2051_v49  ;;  %v2088_v17 = vmul.f32 %v3686_v34, %v2046_v44 }
 0x306   : > { %v2641_v25 = vpop.f32.mrb[16].mxu1 }
 0x307   : > { %v1943_v22 = vadd.f32 %v2641_v25, %v3692_v23  ;;  %v1934_v43 = vpop.f32.mrb[17].mxu1  ;;  %v2049_v25 = vsel %vm784_vm6, %v2047_v60, %v2048_v63 }
 0x308   : > { %v1935_v1 = vadd.f32 %v3692_v23, %v1934_v43  ;;  %v2642_v61 = vpop.f32.mrb[18].mxu1  ;;  %v2089_v27 = vmul.f32 %v3686_v34, %v2049_v25 }
 0x309   : > { %v2098_v0 = vmul.f32 %v3695_v21, %v1943_v22  ;;  %v1946_v46 = vadd.f32 %v2642_v61, %v3692_v23  ;;  %v1937_v51 = vpop.f32.mrb[19].mxu1 }
 0x30a   : > { %v2096_v31 = vmul.f32 %v3695_v21, %v1935_v1  ;;  %v1938_v36 = vadd.f32 %v3692_v23, %v1937_v51  ;;  %v3846_v51 = vld [vmem:[#allocation5_spill] sm:$0xff] }
 0x30b   : > { %v2114_v59 = vadd.f32 %v2098_v0, %v2081_v33  ;;  %v2099_v30 = vmul.f32 %v3695_v21, %v1946_v46  ;;  %v2044_v33 = vsel %vm784_vm6, %v2042_v6, %v2043_v52  ;;  %v2052_v55 = vrot.slane %v3846_v51, 1 }
 0x30c   : > { %v2112_v5 = vadd.f32 %v2096_v31, %v2079_v39  ;;  %v2097_v41 = vmul.f32 %v3695_v21, %v1938_v36  ;;  %v2087_v24 = vmul.f32 %v3686_v34, %v2044_v33  ;;  %v3847_v31 = vld [vmem:[#allocation6_spill] sm:$0xff] }
 0x30d   : > { %2130 = vst.msk [vmem:[%s3714_s9 + $0x10] sm:$0xff] %vm526_vm5, %v2114_v59  ;;  %v2115_v40 = vadd.f32 %v2099_v30, %v2082_v56  ;;  %v2053_v36 = vrot.slane %v3847_v31, 1  ;;  %v3848_v30 = vld [vmem:[#allocation8_spill] sm:$0xff] }
 0x30e   : > { %2128 = vst.msk [vmem:[%s3714_s9] sm:$0xff] %vm526_vm5, %v2112_v5  ;;  %v2113_v38 = vadd.f32 %v2097_v41, %v2080_v58  ;;  %v2645_v50 = vpop.f32.mrb[20].mxu1  ;;  %v2060_v18 = vrot.slane %v3848_v30, 1  ;;  %v3849_v41 = vld [vmem:[#allocation7_spill] sm:$0xff] }
 0x30f   : > { %2131 = vst.msk [vmem:[%s3714_s9 + $0x18] sm:$0xff] %vm526_vm5, %v2115_v40  ;;  %v1959_v53 = vadd.f32 %v2645_v50, %v3692_v23  ;;  %v1950_v42 = vpop.f32.mrb[21].mxu1  ;;  %v2055_v20 = vrot.slane %v3849_v41, 1  ;;  %v2054_v50 = vsel %vm784_vm6, %v2052_v55, %v2053_v36 }
 0x310   : > { %2129 = vst.msk [vmem:[%s3714_s9 + $0x8] sm:$0xff] %vm526_vm5, %v2113_v38  ;;  %v1951_v29 = vadd.f32 %v3692_v23, %v1950_v42  ;;  %v2646_v2 = vpop.f32.mrb[22].mxu1  ;;  %v2061_v42 = vsel %vm784_vm6, %v2058_v16, %v2060_v18  ;;  %v2091_v60 = vmul.f32 %v3686_v34, %v2054_v50 }
 0x311   : > { %v2102_v7 = vmul.f32 %v3695_v21, %v1959_v53  ;;  %v1962_v3 = vadd.f32 %v2646_v2, %v3692_v23  ;;  %v1953_v8 = vpop.f32.mrb[23].mxu1  ;;  %v2056_v2 = vsel %vm784_vm6, %v2053_v36, %v2055_v20 }
 0x312   : > { %v2100_v13 = vmul.f32 %v3695_v21, %v1951_v29  ;;  %v1954_v32 = vadd.f32 %v3692_v23, %v1953_v8  ;;  %v2094_v8 = vmul.f32 %v3686_v34, %v2061_v42 }
 0x313   : > { %v2118_v57 = vadd.f32 %v2102_v7, %v2085_v14  ;;  %v2103_v15 = vmul.f32 %v3695_v21, %v1962_v3 }
 0x314   : > { %v2116_v62 = vadd.f32 %v2100_v13, %v2083_v47  ;;  %v2101_v19 = vmul.f32 %v3695_v21, %v1954_v32  ;;  %v2092_v32 = vmul.f32 %v3686_v34, %v2056_v2 }
 0x315   : > { %2134 = vst.msk [vmem:[%s3714_s9 + $0x30] sm:$0xff] %vm526_vm5, %v2118_v57  ;;  %v2119_v11 = vadd.f32 %v2103_v15, %v2086_v12 }
 0x316   : > { %2132 = vst.msk [vmem:[%s3714_s9 + $0x20] sm:$0xff] %vm526_vm5, %v2116_v62  ;;  %v2117_v26 = vadd.f32 %v2101_v19, %v2084_v28 }
 0x317   : > { %2135 = vst.msk [vmem:[%s3714_s9 + $0x38] sm:$0xff] %vm526_vm5, %v2119_v11  ;;  %v2649_v22 = vpop.f32.mrb[24].mxu1 }
 0x318   : > { %2133 = vst.msk [vmem:[%s3714_s9 + $0x28] sm:$0xff] %vm526_vm5, %v2117_v26  ;;  %v1975_v43 = vadd.f32 %v2649_v22, %v3692_v23  ;;  %v1966_v39 = vpop.f32.mrb[25].mxu1 }
 0x319   : > { %v1967_v1 = vadd.f32 %v3692_v23, %v1966_v39  ;;  %v2650_v61 = vpop.f32.mrb[26].mxu1 }
 0x31a   : > { %v2106_v0 = vmul.f32 %v3695_v21, %v1975_v43  ;;  %v1978_v46 = vadd.f32 %v2650_v61, %v3692_v23  ;;  %v1969_v56 = vpop.f32.mrb[27].mxu1 }
 0x31b   : > { %v2104_v58 = vmul.f32 %v3695_v21, %v1967_v1  ;;  %v1970_v59 = vadd.f32 %v3692_v23, %v1969_v56 }
 0x31c   : > { %v2122_v37 = vadd.f32 %v2106_v0, %v2089_v27  ;;  %v2107_v5 = vmul.f32 %v3695_v21, %v1978_v46 }
 0x31d   : > { %v2120_v54 = vadd.f32 %v2104_v58, %v2087_v24  ;;  %v2105_v40 = vmul.f32 %v3695_v21, %v1970_v59 }
 0x31e   : > { %2138 = vst.msk [vmem:[%s3714_s9 + $0x50] sm:$0xff] %vm526_vm5, %v2122_v37  ;;  %v2123_v38 = vadd.f32 %v2107_v5, %v2090_v9 }
 0x31f   : > { %2136 = vst.msk [vmem:[%s3714_s9 + $0x40] sm:$0xff] %vm526_vm5, %v2120_v54  ;;  %v2121_v53 = vadd.f32 %v2105_v40, %v2088_v17  ;;  %v2653_v14 = vpop.f32.mrb[28].mxu1 }
 0x320   : > { %2139 = vst.msk [vmem:[%s3714_s9 + $0x58] sm:$0xff] %vm526_vm5, %v2123_v38  ;;  %v1991_v47 = vadd.f32 %v2653_v14, %v3692_v23  ;;  %v1982_v29 = vpop.f32.mrb[29].mxu1 }
 0x321   : > { %2137 = vst.msk [vmem:[%s3714_s9 + $0x48] sm:$0xff] %vm526_vm5, %v2121_v53  ;;  %v1983_v12 = vadd.f32 %v3692_v23, %v1982_v29  ;;  %v2654_v63 = vpop.f32.mrb[30].mxu1 }
 0x322   : > { %v2110_v7 = vmul.f32 %v3695_v21, %v1991_v47  ;;  %v1994_v3 = vadd.f32 %v2654_v63, %v3692_v23  ;;  %v1985_v6 = vpop.f32.mrb[31].mxu1 }
 0x323   : > { %v2108_v52 = vmul.f32 %v3695_v21, %v1983_v12  ;;  %v1986_v13 = vadd.f32 %v3692_v23, %v1985_v6 }
 0x324   : > { %v2126_v28 = vadd.f32 %v2110_v7, %v2093_v4  ;;  %v2111_v35 = vmul.f32 %v3695_v21, %v1994_v3 }
 0x325   : > { %v2124_v57 = vadd.f32 %v2108_v52, %v2091_v60  ;;  %v2109_v15 = vmul.f32 %v3695_v21, %v1986_v13 }
 0x326   : > { %2142 = vst.msk [vmem:[%s3714_s9 + $0x70] sm:$0xff] %vm526_vm5, %v2126_v28  ;;  %v2127_v62 = vadd.f32 %v2111_v35, %v2094_v8 }
 0x327   : > { %2140 = vst.msk [vmem:[%s3714_s9 + $0x60] sm:$0xff] %vm526_vm5, %v2124_v57  ;;  %v2125_v19 = vadd.f32 %v2109_v15, %v2092_v32 }
 0x328   : > { %2143 = vst.msk [vmem:[%s3714_s9 + $0x78] sm:$0xff] %vm526_vm5, %v2127_v62 }
 0x329   : > { %2141 = vst.msk [vmem:[%s3714_s9 + $0x68] sm:$0xff] %vm526_vm5, %v2125_v19 }
 0x32a PF: > { %s17_s25 = sadd.s32 1, %s2980_s25   ;;  %s3850_s21 = smov %s2972_s23 }
 0x32b   : > { %p14_p4 = scmp.ge.s32.totalorder %s17_s25, 6   ;;  %s3851_s22 = smov %s2976_s24 }
 0x32c   : > { %s3852_s23 = smov %s3855_s27  ;;  %s3853_s24 = smov %s3859_s28 }
 0x32d   :  { %16 = sbr.rel (!%p14_p4) target bundleno = 3 (0x3), region = 90 }
 0x334   :  { %2173 = vsyncpa [#allocation3], 1 }
 0x335   :  { %2175 = vsyncpa [#allocation3 + $0x1], 1 }

</bundles_post_ra>
